<compile_context>
chip_gen: v5e
topology: v5e:2x2
jax: 0.10.0
libtpu: 0.0.40
codegen_flags: <defaults>
</compile_context>

<pallas_src>
import functools

import jax
import jax.numpy as jnp
from jax.experimental import pallas as pl
from jax.experimental.pallas import tpu as pltpu


# ----------------------------- GRU stack kernel ------------------------------
def _make_gru_stack_kernel(num_layers, seq_len, b_chunk, embed_size, hidden_size,
                           n_sub, unroll):
    L, S, Bc, E, H = num_layers, seq_len, b_chunk, embed_size, hidden_size
    Bh = Bc // n_sub

    def kernel(x_ref, h0_ref, *rest):
        # rest = [W_ih_0, W_hh_0, b_gx_0, b_hn_0, ..., top_ref, hn_ref, gx_ref]
        layer_refs = rest[: 4 * L]
        top_ref = rest[4 * L]           # (S, Bc, H): top-layer h_t (time-major);
                                        # also the rolling layer-input buffer
        hn_ref = rest[4 * L + 1]        # (L, Bc, H): final hidden state per layer
        gx_ref = rest[4 * L + 2]        # (S, Bc, 3H): input-side gate pre-acts

        for l in range(L):              # static unroll over layers
            w_ih_ref = layer_refs[4 * l]       # (in_dim, 3H)  fused [r|z|n]
            w_hh_ref = layer_refs[4 * l + 1]   # (H, 3H)       fused [r|z|n]
            b_gx_ref = layer_refs[4 * l + 2]   # (1, 3H)  folded input-side biases
            b_hn_ref = layer_refs[4 * l + 3]   # (1, H)   hidden-side bias, n gate

            # --- hoisted input projection: ONE big MXU matmul per layer ------
            # TODO(synk): time-chunk this into T_chunk slabs for very large
            # S*Bc*H on v7x's 64 MiB VMEM (bf16 gx already halves the scratch).
            if l == 0:
                x_all = x_ref[...].reshape(S * Bc, E)
            else:
                x_all = top_ref[...].reshape(S * Bc, H)
            gx = jnp.dot(x_all, w_ih_ref[...],
                         preferred_element_type=jnp.float32) + b_gx_ref[...]
            gx_ref[...] = gx.astype(gx_ref.dtype).reshape(S, Bc, 3 * H)

            w_hh = w_hh_ref[...]
            b_hn = b_hn_ref[...]

            # --- serial recurrence: one fused hh matmul + gates per step,
            #     n_sub independent batch sub-chains for unit overlap ---------
            # TODO(synk): for very small Bc on v5e/v6e, pin the fused W_hh in
            # MXU weight registers via matmul_push_rhs/acc_lhs/pop.
            def step(t, hs):
                gx_t = gx_ref[t].astype(jnp.float32)          # (Bc, 3H)
                new_hs = []
                for c in range(n_sub):
                    h = hs[c]
                    lo = c * Bh
                    gh = jnp.dot(h.astype(w_hh.dtype), w_hh,
                                 preferred_element_type=jnp.float32)  # (Bh, 3H)
                    gxc = gx_t[lo:lo + Bh] if n_sub > 1 else gx_t
                    r = jax.nn.sigmoid(gxc[:, :H] + gh[:, :H])
                    z = jax.nn.sigmoid(gxc[:, H:2 * H] + gh[:, H:2 * H])
                    n = jnp.tanh(gxc[:, 2 * H:] + r * (gh[:, 2 * H:] + b_hn))
                    h_new = (1.0 - z) * n + z * h
                    if n_sub > 1:
                        top_ref[t, lo:lo + Bh] = h_new.astype(top_ref.dtype)
                    else:
                        top_ref[t] = h_new.astype(top_ref.dtype)
                    new_hs.append(h_new)
                return tuple(new_hs)

            if n_sub > 1:
                h_init = tuple(h0_ref[l, c * Bh:(c + 1) * Bh] for c in range(n_sub))
            else:
                h_init = (h0_ref[l],)
            h_last = jax.lax.fori_loop(0, S, step, h_init, unroll=unroll)

            for c in range(n_sub):                 # written once per layer
                if n_sub > 1:
                    hn_ref[l, c * Bh:(c + 1) * Bh] = h_last[c]
                else:
                    hn_ref[l] = h_last[0]

    return kernel


# --------------------------- output projection kernel ------------------------
def _projection_kernel(x_ref, w_ref, b_ref, o_ref):
    acc = jnp.dot(x_ref[...], w_ref[...], preferred_element_type=jnp.float32)
    o_ref[...] = (acc + b_ref[...]).astype(o_ref.dtype)


def _largest_tile(n, target, multiple):
    """Largest t <= target with t % multiple == 0 and n % t == 0 (fallback: n)."""
    best = None
    t = multiple
    while t <= min(n, target):
        if n % t == 0:
            best = t
        t += multiple
    return best if best is not None else n


def _default_vmem_limit_bytes():
    """Generation-aware scoped-VMEM limit: ~85% of capacity, capped at 110 MiB
    (=> ~110 MiB on 128-MiB v5e/v6e, ~54 MiB on 64-MiB v7x)."""
    try:
        cap = int(pltpu.get_tpu_info().vmem_capacity_bytes)
    except Exception:
        return 64 * 1024 * 1024          # safe default on every generation
    return min(int(cap * 0.85), 110 * 1024 * 1024)


# --------------------------------- wrapper -----------------------------------
def rnn_decoder_forward(inputs, h0, params, *,
                        matmul_dtype=jnp.bfloat16,
                        batch_chunks=1,
                        interleave_subchunks=True,
                        vmem_limit_bytes=None):
    """Forward pass of RNNDecoder (embedding -> StackedGRU -> Linear).

    Args:
      inputs: (B, S) int32 token ids
      h0:     (L, B, H) float32 initial hidden state
      params: dict with 'embed' (V, E), per-layer GRU weights
              [(W_ih (in,3H), W_hh (H,3H), b_ih (3H,), b_hh (3H,))],
              'mlp_w' (H, V), 'mlp_b' (V,)
    Returns:
      logits: (B, S, V) float32, h_n: (L, B, H) float32
    """
    embed = params["embed"]
    layers = params["layers"]
    mlp_w, mlp_b = params["mlp_w"], params["mlp_b"]

    B, S = inputs.shape
    L, _, H = h0.shape
    E = embed.shape[1]
    V = mlp_w.shape[1]
    mdtype = matmul_dtype
    vmem_limit = int(vmem_limit_bytes) if vmem_limit_bytes else _default_vmem_limit_bytes()

    assert B % batch_chunks == 0
    Bc = B // batch_chunks
    sub_align = 8 if jnp.dtype(mdtype).itemsize >= 4 else 16   # f32: 8, bf16: 16 sublanes
    assert Bc % sub_align == 0 or Bc == B, (
        "batch chunk must be a multiple of the sublane tile (8 f32 / 16 bf16) "
        "or the full batch")

    # Two independent batch sub-chains inside the time loop (MXU/VPU/EUP overlap
    # on the latency-bound recurrence) whenever both halves stay tile-aligned.
    n_sub = 2 if (interleave_subchunks and Bc % (2 * sub_align) == 0) else 1

    # Embedding gather, emitted time-major (S, B, E); table cast once so the
    # gather writes matmul_dtype directly (half the gather HBM write in bf16).
    # TODO(synk): the data-dependent row gather itself is left to XLA.
    x_tm = jnp.take(embed.astype(mdtype), inputs.T, axis=0)

    # -------- per-layer weight prep: fused [r|z|n] layout + folded biases -----
    const2 = lambda ib: (0, 0)
    weight_args, weight_specs = [], []
    for (w_ih, w_hh, b_ih, b_hh) in layers:
        in_dim = w_ih.shape[0]
        b_gx = jnp.concatenate([b_ih[:2 * H] + b_hh[:2 * H],        # r,z: b_ih + b_hh
                                b_ih[2 * H:]]).reshape(1, 3 * H)    # n:   b_ih only
        b_hn = b_hh[2 * H:].reshape(1, H)                           # stays inside r*(.)
        weight_args += [w_ih.astype(mdtype), w_hh.astype(mdtype),
                        b_gx.astype(jnp.float32), b_hn.astype(jnp.float32)]
        weight_specs += [
            pl.BlockSpec((in_dim, 3 * H), const2),
            pl.BlockSpec((H, 3 * H), const2),
            pl.BlockSpec((1, 3 * H), const2),
            pl.BlockSpec((1, H), const2),
        ]
        # TODO(synk): single-buffer these constant-index weight specs
        # (pipeline_mode=pl.Buffered(1)) when large-H v7x VMEM fit matters.

    unroll = True if S <= 32 else 4
    kernel = _make_gru_stack_kernel(L, S, Bc, E, H, n_sub, unroll)
    gx_dtype = jnp.float32 if jnp.dtype(mdtype).itemsize >= 4 else mdtype

    top_h, h_n = pl.pallas_call(
        kernel,
        out_shape=(
            jax.ShapeDtypeStruct((S, B, H), mdtype),       # top-layer h_t, time-major
            jax.ShapeDtypeStruct((L, B, H), jnp.float32),  # final hidden state
        ),
        grid=(batch_chunks,),
        in_specs=[
            pl.BlockSpec((S, Bc, E), lambda ib: (0, ib, 0)),
            pl.BlockSpec((L, Bc, H), lambda ib: (0, ib, 0)),
            *weight_specs,
        ],
        out_specs=(
            pl.BlockSpec((S, Bc, H), lambda ib: (0, ib, 0)),
            pl.BlockSpec((L, Bc, H), lambda ib: (0, ib, 0)),
        ),
        scratch_shapes=[pltpu.VMEM((S, Bc, 3 * H), gx_dtype)],
        compiler_params=pltpu.CompilerParams(
            dimension_semantics=("parallel",),     # batch chunks are independent
            vmem_limit_bytes=vmem_limit),
    )(x_tm, h0, *weight_args)

    # -------- output projection: rows-inner tiled matmul, batch-major output --
    Vp = ((V + 127) // 128) * 128                  # lane-dense vocab (no-op if aligned)
    w_m = (mlp_w if Vp == V else jnp.pad(mlp_w, ((0, 0), (0, Vp - V)))).astype(mdtype)
    b_m = (mlp_b if Vp == V else jnp.pad(mlp_b, (0, Vp - V)))
    b_m = b_m.reshape(1, Vp).astype(jnp.float32)

    # Layout fix BEFORE the projection: transposing the H-wide activations is
    # ~Vp/H cheaper in HBM traffic than transposing the f32 logits afterwards.
    n_rows = B * S
    top_bm = jnp.transpose(top_h, (1, 0, 2)).reshape(n_rows, H)

    tr = _largest_tile(n_rows, 512, 8)
    tv = _largest_tile(Vp, 512, 128)

    logits_flat = pl.pallas_call(
        _projection_kernel,
        out_shape=jax.ShapeDtypeStruct((n_rows, Vp), jnp.float32),
        # Rows are the inner (fast) grid axis: the (H, Vp) vocab-weight block
        # index is constant over it, so W is fetched once per vocab tile; the
        # (much smaller) activation rows are re-streamed instead.
        grid=(Vp // tv, n_rows // tr),
        in_specs=[
            pl.BlockSpec((tr, H), lambda j, i: (i, 0)),
            pl.BlockSpec((H, tv), lambda j, i: (0, j)),
            pl.BlockSpec((1, tv), lambda j, i: (0, j)),
        ],
        out_specs=pl.BlockSpec((tr, tv), lambda j, i: (i, j)),
        compiler_params=pltpu.CompilerParams(
            dimension_semantics=("parallel", "parallel"),
            vmem_limit_bytes=vmem_limit),
    )(top_bm, w_m, b_m)

    logits = logits_flat.reshape(B, S, Vp)
    if Vp != V:                       # only when the vocab needed lane padding
        logits = logits[:, :, :V]
    return logits, h_n


# ----------------------------- pure-JAX reference ----------------------------
def ref_forward(inputs, h0, params):
    embed = params["embed"]
    layers = params["layers"]
    mlp_w, mlp_b = params["mlp_w"], params["mlp_b"]

    x = embed[inputs]                  # (B, S, E)
    B, S, _ = x.shape
    H = h0.shape[-1]
    h_n = []
    for l, (w_ih, w_hh, b_ih, b_hh) in enumerate(layers):
        h = h0[l]
        ys = []
        for t in range(S):
            xt = x[:, t]
            gx = xt @ w_ih + b_ih
            gh = h @ w_hh + b_hh
            r = jax.nn.sigmoid(gx[:, :H] + gh[:, :H])
            z = jax.nn.sigmoid(gx[:, H:2 * H] + gh[:, H:2 * H])
            n = jnp.tanh(gx[:, 2 * H:] + r * gh[:, 2 * H:])
            h = (1.0 - z) * n + z * h
            ys.append(h)
        x = jnp.stack(ys, axis=1)
        h_n.append(h)
    logits = x @ mlp_w + mlp_b
    return logits, jnp.stack(h_n)


# ----------------------------------- main ------------------------------------
def _make_case(key, B, S, E, H, V, L):
    keys = jax.random.split(key, 4 * L + 5)
    k = iter(keys)
    scale = 1.0 / jnp.sqrt(jnp.float32(H))
    uni = lambda kk, shape: jax.random.uniform(kk, shape, jnp.float32, -scale, scale)
    params = {
        "embed": jax.random.normal(next(k), (V, E), jnp.float32) * 0.1,
        "layers": [],
        "mlp_w": uni(next(k), (H, V)),
        "mlp_b": uni(next(k), (V,)),
    }
    for l in range(L):
        in_dim = E if l == 0 else H
        params["layers"].append((
            uni(next(k), (in_dim, 3 * H)),   # W_ih^T  (PyTorch stores (3H, in))
            uni(next(k), (H, 3 * H)),        # W_hh^T
            uni(next(k), (3 * H,)),          # b_ih
            uni(next(k), (3 * H,)),          # b_hh
        ))
    inputs = jax.random.randint(next(k), (B, S), 0, V, jnp.int32)
    h0 = jax.random.normal(next(k), (L, B, H), jnp.float32) * 0.1
    return inputs, h0, params


if __name__ == "__main__":
    key = jax.random.PRNGKey(0)
    k1, k2 = jax.random.split(key)

    # ---- Case 1: tiny module-scale shapes (padded layouts, single chain) -----
    B, S, E, H, L, V = 8, 8, 32, 32, 2, 64
    inputs, h0, params = _make_case(k1, B, S, E, H, V, L)
    logits_ref, hn_ref_ = ref_forward(inputs, h0, params)

    fwd_f32 = jax.jit(functools.partial(rnn_decoder_forward,
                                        matmul_dtype=jnp.float32))
    lo32, hn32 = jax.block_until_ready(fwd_f32(inputs, h0, params))
    assert lo32.shape == (B, S, V) and hn32.shape == (L, B, H)
    assert jnp.allclose(lo32, logits_ref, atol=1e-3, rtol=1e-3)
    assert jnp.allclose(hn32, hn_ref_, atol=1e-3, rtol=1e-3)

    fwd_bf16 = jax.jit(functools.partial(rnn_decoder_forward,
                                         matmul_dtype=jnp.bfloat16))
    lo16, hn16 = jax.block_until_ready(fwd_bf16(inputs, h0, params))
    assert lo16.shape == (B, S, V) and hn16.shape == (L, B, H)
    assert jnp.allclose(lo16, logits_ref, atol=1e-1, rtol=1e-1)
    assert jnp.allclose(hn16, hn_ref_, atol=1e-1, rtol=1e-1)

    # ---- Case 2: lane-aligned shapes (H, V multiples of 128), 2 batch chunks
    #      (megacore grid axis) and 2 interleaved batch sub-chains per chunk ---
    B, S, E, H, L, V = 64, 12, 64, 128, 2, 256
    inputs, h0, params = _make_case(k2, B, S, E, H, V, L)
    logits_ref, hn_ref_ = ref_forward(inputs, h0, params)

    fwd_f32c = jax.jit(functools.partial(rnn_decoder_forward,
                                         matmul_dtype=jnp.float32,
                                         batch_chunks=2))
    lo32, hn32 = jax.block_until_ready(fwd_f32c(inputs, h0, params))
    assert lo32.shape == (B, S, V) and hn32.shape == (L, B, H)
    assert jnp.allclose(lo32, logits_ref, atol=1e-3, rtol=1e-3)
    assert jnp.allclose(hn32, hn_ref_, atol=1e-3, rtol=1e-3)

    fwd_bf16c = jax.jit(functools.partial(rnn_decoder_forward,
                                          matmul_dtype=jnp.bfloat16,
                                          batch_chunks=2))
    lo16, hn16 = jax.block_until_ready(fwd_bf16c(inputs, h0, params))
    assert lo16.shape == (B, S, V) and hn16.shape == (L, B, H)
    assert jnp.allclose(lo16, logits_ref, atol=2e-1, rtol=2e-1)
    assert jnp.allclose(hn16, hn_ref_, atol=2e-1, rtol=2e-1)

    print("KERNEL_OK")
</pallas_src>

<mosaic_0001>
module attributes {stable_mosaic.version = 11 : i64} {
  func.func @_projection_kernel(%arg0: i32, %arg1: i32, %arg2: memref<64x32xf32, #tpu.memory_space<vmem>>, %arg3: memref<32x128xf32, #tpu.memory_space<vmem>>, %arg4: memref<1x128xf32, #tpu.memory_space<vmem>>, %arg5: memref<64x128xf32, #tpu.memory_space<vmem>>) attributes {dimension_semantics = [#tpu.dimension_semantics<parallel>, #tpu.dimension_semantics<parallel>], iteration_bounds = array<i64: 1, 1>, scalar_prefetch = 0 : i64, scratch_operands = 0 : i64, tpu.core_type = #tpu.core_type<tc>, window_params = [{transform_indices = @transform_0, window_bounds = array<i64: 64, 32>}, {transform_indices = @transform_1, window_bounds = array<i64: 32, 128>}, {transform_indices = @transform_2, window_bounds = array<i64: 1, 128>}, {transform_indices = @transform_3, window_bounds = array<i64: 64, 128>}]} {
    %c0 = arith.constant 0 : index
    %c0_0 = arith.constant 0 : index
    %0 = vector.load %arg2[%c0, %c0_0] : memref<64x32xf32, #tpu.memory_space<vmem>>, vector<64x32xf32>
    %c0_1 = arith.constant 0 : index
    %c0_2 = arith.constant 0 : index
    %1 = vector.load %arg3[%c0_1, %c0_2] : memref<32x128xf32, #tpu.memory_space<vmem>>, vector<32x128xf32>
    %cst = arith.constant dense<0.000000e+00> : vector<64x128xf32>
    %2 = tpu.matmul %0, %1, %cst {dimension_numbers = #tpu.dot_dimension_numbers<[1], [0], [0], [1], [0, 0, 1, 1], [], []>} : vector<64x32xf32>, vector<32x128xf32>, vector<64x128xf32> -> vector<64x128xf32>
    %c0_3 = arith.constant 0 : index
    %c0_4 = arith.constant 0 : index
    %3 = vector.load %arg4[%c0_3, %c0_4] : memref<1x128xf32, #tpu.memory_space<vmem>>, vector<1x128xf32>
    %4 = vector.broadcast %3 : vector<1x128xf32> to vector<64x128xf32>
    %5 = arith.addf %2, %4 : vector<64x128xf32>
    %c0_5 = arith.constant 0 : index
    %c0_6 = arith.constant 0 : index
    %6 = vector.load %arg5[%c0_5, %c0_6] : memref<64x128xf32, #tpu.memory_space<vmem>>, vector<64x128xf32>
    tpu.vector_store %arg5[%c0_5, %c0_6], %5 {strides = array<i32>} : memref<64x128xf32, #tpu.memory_space<vmem>>, vector<64x128xf32>,
    return
  }
  func.func @transform_0(%arg0: i32, %arg1: i32) -> (i32, i32) {
    %c0_i32 = arith.constant 0 : i32
    %c0_i32_0 = arith.constant 0 : i32
    return %arg1, %c0_i32 : i32, i32
  }
  func.func @transform_1(%arg0: i32, %arg1: i32) -> (i32, i32) {
    %c0_i32 = arith.constant 0 : i32
    %c0_i32_0 = arith.constant 0 : i32
    return %c0_i32, %arg0 : i32, i32
  }
  func.func @transform_2(%arg0: i32, %arg1: i32) -> (i32, i32) {
    %c0_i32 = arith.constant 0 : i32
    %c0_i32_0 = arith.constant 0 : i32
    return %c0_i32, %arg0 : i32, i32
  }
  func.func @transform_3(%arg0: i32, %arg1: i32) -> (i32, i32) {
    %c0_i32 = arith.constant 0 : i32
    return %arg1, %arg0 : i32, i32
  }
}

module attributes {stable_mosaic.version = 11 : i64} {
  func.func @kernel(%arg0: i32, %arg1: memref<8x8x32xf32, #tpu.memory_space<vmem>>, %arg2: memref<2x8x32xf32, #tpu.memory_space<vmem>>, %arg3: memref<32x96xf32, #tpu.memory_space<vmem>>, %arg4: memref<32x96xf32, #tpu.memory_space<vmem>>, %arg5: memref<1x96xf32, #tpu.memory_space<vmem>>, %arg6: memref<1x32xf32, #tpu.memory_space<vmem>>, %arg7: memref<32x96xf32, #tpu.memory_space<vmem>>, %arg8: memref<32x96xf32, #tpu.memory_space<vmem>>, %arg9: memref<1x96xf32, #tpu.memory_space<vmem>>, %arg10: memref<1x32xf32, #tpu.memory_space<vmem>>, %arg11: memref<8x8x32xf32, #tpu.memory_space<vmem>>, %arg12: memref<2x8x32xf32, #tpu.memory_space<vmem>>, %arg13: memref<8x8x96xf32, #tpu.memory_space<vmem>>) attributes {dimension_semantics = [#tpu.dimension_semantics<parallel>], iteration_bounds = array<i64: 1>, scalar_prefetch = 0 : i64, scratch_operands = 1 : i64, tpu.core_type = #tpu.core_type<tc>, window_params = [{transform_indices = @transform_0, window_bounds = array<i64: 8, 8, 32>}, {transform_indices = @transform_1, window_bounds = array<i64: 2, 8, 32>}, {pipeline_mode = #tpu.pipeline_mode<synchronous>, transform_indices = @transform_2, window_bounds = array<i64: 32, 96>}, {pipeline_mode = #tpu.pipeline_mode<synchronous>, transform_indices = @transform_3, window_bounds = array<i64: 32, 96>}, {pipeline_mode = #tpu.pipeline_mode<synchronous>, transform_indices = @transform_4, window_bounds = array<i64: 1, 96>}, {pipeline_mode = #tpu.pipeline_mode<synchronous>, transform_indices = @transform_5, window_bounds = array<i64: 1, 32>}, {pipeline_mode = #tpu.pipeline_mode<synchronous>, transform_indices = @transform_6, window_bounds = array<i64: 32, 96>}, {pipeline_mode = #tpu.pipeline_mode<synchronous>, transform_indices = @transform_7, window_bounds = array<i64: 32, 96>}, {pipeline_mode = #tpu.pipeline_mode<synchronous>, transform_indices = @transform_8, window_bounds = array<i64: 1, 96>}, {pipeline_mode = #tpu.pipeline_mode<synchronous>, transform_indices = @transform_9, window_bounds = array<i64: 1, 32>}, {transform_indices = @transform_10, window_bounds = array<i64: 8, 8, 32>}, {transform_indices = @transform_11, window_bounds = array<i64: 2, 8, 32>}]} {
    %c0 = arith.constant 0 : index
    %c0_0 = arith.constant 0 : index
    %c0_1 = arith.constant 0 : index
    %0 = vector.load %arg1[%c0, %c0_0, %c0_1] : memref<8x8x32xf32, #tpu.memory_space<vmem>>, vector<8x8x32xf32>
    %1 = vector.shape_cast %0 : vector<8x8x32xf32> to vector<64x32xf32>
    %c0_2 = arith.constant 0 : index
    %c0_3 = arith.constant 0 : index
    %2 = vector.load %arg3[%c0_2, %c0_3] : memref<32x96xf32, #tpu.memory_space<vmem>>, vector<32x96xf32>
    %cst = arith.constant dense<0.000000e+00> : vector<64x96xf32>
    %3 = tpu.matmul %1, %2, %cst {dimension_numbers = #tpu.dot_dimension_numbers<[1], [0], [0], [1], [0, 0, 1, 1], [], []>} : vector<64x32xf32>, vector<32x96xf32>, vector<64x96xf32> -> vector<64x96xf32>
    %c0_4 = arith.constant 0 : index
    %c0_5 = arith.constant 0 : index
    %4 = vector.load %arg5[%c0_4, %c0_5] : memref<1x96xf32, #tpu.memory_space<vmem>>, vector<1x96xf32>
    %5 = vector.broadcast %4 : vector<1x96xf32> to vector<64x96xf32>
    %6 = arith.addf %3, %5 : vector<64x96xf32>
    %7 = vector.shape_cast %6 : vector<64x96xf32> to vector<8x8x96xf32>
    %c0_6 = arith.constant 0 : index
    %c0_7 = arith.constant 0 : index
    %c0_8 = arith.constant 0 : index
    %8 = vector.load %arg13[%c0_6, %c0_7, %c0_8] : memref<8x8x96xf32, #tpu.memory_space<vmem>>, vector<8x8x96xf32>
    tpu.vector_store %arg13[%c0_6, %c0_7, %c0_8], %7 {strides = array<i32>} : memref<8x8x96xf32, #tpu.memory_space<vmem>>, vector<8x8x96xf32>,
    %c0_9 = arith.constant 0 : index
    %c0_10 = arith.constant 0 : index
    %9 = vector.load %arg4[%c0_9, %c0_10] : memref<32x96xf32, #tpu.memory_space<vmem>>, vector<32x96xf32>
    %c0_11 = arith.constant 0 : index
    %c0_12 = arith.constant 0 : index
    %10 = vector.load %arg6[%c0_11, %c0_12] : memref<1x32xf32, #tpu.memory_space<vmem>>, vector<1x32xf32>
    %c0_13 = arith.constant 0 : index
    %c0_14 = arith.constant 0 : index
    %c0_15 = arith.constant 0 : index
    %11 = vector.load %arg2[%c0_13, %c0_14, %c0_15] : memref<2x8x32xf32, #tpu.memory_space<vmem>>, vector<1x8x32xf32>
    %12 = vector.shape_cast %11 : vector<1x8x32xf32> to vector<8x32xf32>
    %c0_i32 = arith.constant 0 : i32
    %13 = arith.index_cast %c0_i32 : i32 to index
    %c0_16 = arith.constant 0 : index
    %c0_17 = arith.constant 0 : index
    %14 = vector.load %arg13[%13, %c0_16, %c0_17] : memref<8x8x96xf32, #tpu.memory_space<vmem>>, vector<1x8x96xf32>
    %15 = vector.shape_cast %14 : vector<1x8x96xf32> to vector<8x96xf32>
    %cst_18 = arith.constant dense<0.000000e+00> : vector<8x96xf32>
    %16 = tpu.matmul %12, %9, %cst_18 {dimension_numbers = #tpu.dot_dimension_numbers<[1], [0], [0], [1], [0, 0, 1, 1], [], []>} : vector<8x32xf32>, vector<32x96xf32>, vector<8x96xf32> -> vector<8x96xf32>
    %17 = vector.extract_strided_slice %15 {offsets = [0, 0], sizes = [8, 32], strides = [1, 1]} : vector<8x96xf32> to vector<8x32xf32>
    %18 = vector.extract_strided_slice %16 {offsets = [0, 0], sizes = [8, 32], strides = [1, 1]} : vector<8x96xf32> to vector<8x32xf32>
    %19 = arith.addf %17, %18 : vector<8x32xf32>
    %20 = arith.negf %19 : vector<8x32xf32>
    %21 = math.exp %20 : vector<8x32xf32>
    %cst_19 = arith.constant 1.000000e+00 : f32
    %22 = vector.broadcast %cst_19 : f32 to vector<8x32xf32>
    %23 = arith.addf %22, %21 : vector<8x32xf32>
    %24 = arith.divf %22, %23 : vector<8x32xf32>
    %25 = vector.extract_strided_slice %15 {offsets = [0, 32], sizes = [8, 32], strides = [1, 1]} : vector<8x96xf32> to vector<8x32xf32>
    %26 = vector.extract_strided_slice %16 {offsets = [0, 32], sizes = [8, 32], strides = [1, 1]} : vector<8x96xf32> to vector<8x32xf32>
    %27 = arith.addf %25, %26 : vector<8x32xf32>
    %28 = arith.negf %27 : vector<8x32xf32>
    %29 = math.exp %28 : vector<8x32xf32>
    %cst_20 = arith.constant 1.000000e+00 : f32
    %30 = vector.broadcast %cst_20 : f32 to vector<8x32xf32>
    %31 = arith.addf %30, %29 : vector<8x32xf32>
    %32 = arith.divf %30, %31 : vector<8x32xf32>
    %33 = vector.extract_strided_slice %15 {offsets = [0, 64], sizes = [8, 32], strides = [1, 1]} : vector<8x96xf32> to vector<8x32xf32>
    %34 = vector.extract_strided_slice %16 {offsets = [0, 64], sizes = [8, 32], strides = [1, 1]} : vector<8x96xf32> to vector<8x32xf32>
    %35 = vector.broadcast %10 : vector<1x32xf32> to vector<8x32xf32>
    %36 = arith.addf %34, %35 : vector<8x32xf32>
    %37 = arith.mulf %24, %36 : vector<8x32xf32>
    %38 = arith.addf %33, %37 : vector<8x32xf32>
    %39 = math.tanh %38 : vector<8x32xf32>
    %cst_21 = arith.constant 1.000000e+00 : f32
    %40 = vector.broadcast %cst_21 : f32 to vector<8x32xf32>
    %41 = arith.subf %40, %32 : vector<8x32xf32>
    %42 = arith.mulf %41, %39 : vector<8x32xf32>
    %43 = arith.mulf %32, %12 : vector<8x32xf32>
    %44 = arith.addf %42, %43 : vector<8x32xf32>
    %45 = arith.index_cast %c0_i32 : i32 to index
    %c0_22 = arith.constant 0 : index
    %c0_23 = arith.constant 0 : index
    %46 = vector.load %arg11[%45, %c0_22, %c0_23] : memref<8x8x32xf32, #tpu.memory_space<vmem>>, vector<1x8x32xf32>
    %47 = vector.shape_cast %46 : vector<1x8x32xf32> to vector<8x32xf32>
    %48 = vector.shape_cast %44 : vector<8x32xf32> to vector<1x8x32xf32>
    tpu.vector_store %arg11[%45, %c0_22, %c0_23], %48 {strides = array<i32>} : memref<8x8x32xf32, #tpu.memory_space<vmem>>, vector<1x8x32xf32>,
    %c1_i32 = arith.constant 1 : i32
    %49 = arith.index_cast %c1_i32 : i32 to index
    %c0_24 = arith.constant 0 : index
    %c0_25 = arith.constant 0 : index
    %50 = vector.load %arg13[%49, %c0_24, %c0_25] : memref<8x8x96xf32, #tpu.memory_space<vmem>>, vector<1x8x96xf32>
    %51 = vector.shape_cast %50 : vector<1x8x96xf32> to vector<8x96xf32>
    %cst_26 = arith.constant dense<0.000000e+00> : vector<8x96xf32>
    %52 = tpu.matmul %44, %9, %cst_26 {dimension_numbers = #tpu.dot_dimension_numbers<[1], [0], [0], [1], [0, 0, 1, 1], [], []>} : vector<8x32xf32>, vector<32x96xf32>, vector<8x96xf32> -> vector<8x96xf32>
    %53 = vector.extract_strided_slice %51 {offsets = [0, 0], sizes = [8, 32], strides = [1, 1]} : vector<8x96xf32> to vector<8x32xf32>
    %54 = vector.extract_strided_slice %52 {offsets = [0, 0], sizes = [8, 32], strides = [1, 1]} : vector<8x96xf32> to vector<8x32xf32>
    %55 = arith.addf %53, %54 : vector<8x32xf32>
    %56 = arith.negf %55 : vector<8x32xf32>
    %57 = math.exp %56 : vector<8x32xf32>
    %cst_27 = arith.constant 1.000000e+00 : f32
    %58 = vector.broadcast %cst_27 : f32 to vector<8x32xf32>
    %59 = arith.addf %58, %57 : vector<8x32xf32>
    %60 = arith.divf %58, %59 : vector<8x32xf32>
    %61 = vector.extract_strided_slice %51 {offsets = [0, 32], sizes = [8, 32], strides = [1, 1]} : vector<8x96xf32> to vector<8x32xf32>
    %62 = vector.extract_strided_slice %52 {offsets = [0, 32], sizes = [8, 32], strides = [1, 1]} : vector<8x96xf32> to vector<8x32xf32>
    %63 = arith.addf %61, %62 : vector<8x32xf32>
    %64 = arith.negf %63 : vector<8x32xf32>
    %65 = math.exp %64 : vector<8x32xf32>
    %cst_28 = arith.constant 1.000000e+00 : f32
    %66 = vector.broadcast %cst_28 : f32 to vector<8x32xf32>
    %67 = arith.addf %66, %65 : vector<8x32xf32>
    %68 = arith.divf %66, %67 : vector<8x32xf32>
    %69 = vector.extract_strided_slice %51 {offsets = [0, 64], sizes = [8, 32], strides = [1, 1]} : vector<8x96xf32> to vector<8x32xf32>
    %70 = vector.extract_strided_slice %52 {offsets = [0, 64], sizes = [8, 32], strides = [1, 1]} : vector<8x96xf32> to vector<8x32xf32>
    %71 = vector.broadcast %10 : vector<1x32xf32> to vector<8x32xf32>
    %72 = arith.addf %70, %71 : vector<8x32xf32>
    %73 = arith.mulf %60, %72 : vector<8x32xf32>
    %74 = arith.addf %69, %73 : vector<8x32xf32>
    %75 = math.tanh %74 : vector<8x32xf32>
    %cst_29 = arith.constant 1.000000e+00 : f32
    %76 = vector.broadcast %cst_29 : f32 to vector<8x32xf32>
    %77 = arith.subf %76, %68 : vector<8x32xf32>
    %78 = arith.mulf %77, %75 : vector<8x32xf32>
    %79 = arith.mulf %68, %44 : vector<8x32xf32>
    %80 = arith.addf %78, %79 : vector<8x32xf32>
    %81 = arith.index_cast %c1_i32 : i32 to index
    %c0_30 = arith.constant 0 : index
    %c0_31 = arith.constant 0 : index
    %82 = vector.load %arg11[%81, %c0_30, %c0_31] : memref<8x8x32xf32, #tpu.memory_space<vmem>>, vector<1x8x32xf32>
    %83 = vector.shape_cast %82 : vector<1x8x32xf32> to vector<8x32xf32>
    %84 = vector.shape_cast %80 : vector<8x32xf32> to vector<1x8x32xf32>
    tpu.vector_store %arg11[%81, %c0_30, %c0_31], %84 {strides = array<i32>} : memref<8x8x32xf32, #tpu.memory_space<vmem>>, vector<1x8x32xf32>,
    %c2_i32 = arith.constant 2 : i32
    %85 = arith.index_cast %c2_i32 : i32 to index
    %c0_32 = arith.constant 0 : index
    %c0_33 = arith.constant 0 : index
    %86 = vector.load %arg13[%85, %c0_32, %c0_33] : memref<8x8x96xf32, #tpu.memory_space<vmem>>, vector<1x8x96xf32>
    %87 = vector.shape_cast %86 : vector<1x8x96xf32> to vector<8x96xf32>
    %cst_34 = arith.constant dense<0.000000e+00> : vector<8x96xf32>
    %88 = tpu.matmul %80, %9, %cst_34 {dimension_numbers = #tpu.dot_dimension_numbers<[1], [0], [0], [1], [0, 0, 1, 1], [], []>} : vector<8x32xf32>, vector<32x96xf32>, vector<8x96xf32> -> vector<8x96xf32>
    %89 = vector.extract_strided_slice %87 {offsets = [0, 0], sizes = [8, 32], strides = [1, 1]} : vector<8x96xf32> to vector<8x32xf32>
    %90 = vector.extract_strided_slice %88 {offsets = [0, 0], sizes = [8, 32], strides = [1, 1]} : vector<8x96xf32> to vector<8x32xf32>
    %91 = arith.addf %89, %90 : vector<8x32xf32>
    %92 = arith.negf %91 : vector<8x32xf32>
    %93 = math.exp %92 : vector<8x32xf32>
    %cst_35 = arith.constant 1.000000e+00 : f32
    %94 = vector.broadcast %cst_35 : f32 to vector<8x32xf32>
    %95 = arith.addf %94, %93 : vector<8x32xf32>
    %96 = arith.divf %94, %95 : vector<8x32xf32>
    %97 = vector.extract_strided_slice %87 {offsets = [0, 32], sizes = [8, 32], strides = [1, 1]} : vector<8x96xf32> to vector<8x32xf32>
    %98 = vector.extract_strided_slice %88 {offsets = [0, 32], sizes = [8, 32], strides = [1, 1]} : vector<8x96xf32> to vector<8x32xf32>
    %99 = arith.addf %97, %98 : vector<8x32xf32>
    %100 = arith.negf %99 : vector<8x32xf32>
    %101 = math.exp %100 : vector<8x32xf32>
    %cst_36 = arith.constant 1.000000e+00 : f32
    %102 = vector.broadcast %cst_36 : f32 to vector<8x32xf32>
    %103 = arith.addf %102, %101 : vector<8x32xf32>
    %104 = arith.divf %102, %103 : vector<8x32xf32>
    %105 = vector.extract_strided_slice %87 {offsets = [0, 64], sizes = [8, 32], strides = [1, 1]} : vector<8x96xf32> to vector<8x32xf32>
    %106 = vector.extract_strided_slice %88 {offsets = [0, 64], sizes = [8, 32], strides = [1, 1]} : vector<8x96xf32> to vector<8x32xf32>
    %107 = vector.broadcast %10 : vector<1x32xf32> to vector<8x32xf32>
    %108 = arith.addf %106, %107 : vector<8x32xf32>
    %109 = arith.mulf %96, %108 : vector<8x32xf32>
    %110 = arith.addf %105, %109 : vector<8x32xf32>
    %111 = math.tanh %110 : vector<8x32xf32>
    %cst_37 = arith.constant 1.000000e+00 : f32
    %112 = vector.broadcast %cst_37 : f32 to vector<8x32xf32>
    %113 = arith.subf %112, %104 : vector<8x32xf32>
    %114 = arith.mulf %113, %111 : vector<8x32xf32>
    %115 = arith.mulf %104, %80 : vector<8x32xf32>
    %116 = arith.addf %114, %115 : vector<8x32xf32>
    %117 = arith.index_cast %c2_i32 : i32 to index
    %c0_38 = arith.constant 0 : index
    %c0_39 = arith.constant 0 : index
    %118 = vector.load %arg11[%117, %c0_38, %c0_39] : memref<8x8x32xf32, #tpu.memory_space<vmem>>, vector<1x8x32xf32>
    %119 = vector.shape_cast %118 : vector<1x8x32xf32> to vector<8x32xf32>
    %120 = vector.shape_cast %116 : vector<8x32xf32> to vector<1x8x32xf32>
    tpu.vector_store %arg11[%117, %c0_38, %c0_39], %120 {strides = array<i32>} : memref<8x8x32xf32, #tpu.memory_space<vmem>>, vector<1x8x32xf32>,
    %c3_i32 = arith.constant 3 : i32
    %121 = arith.index_cast %c3_i32 : i32 to index
    %c0_40 = arith.constant 0 : index
    %c0_41 = arith.constant 0 : index
    %122 = vector.load %arg13[%121, %c0_40, %c0_41] : memref<8x8x96xf32, #tpu.memory_space<vmem>>, vector<1x8x96xf32>
    %123 = vector.shape_cast %122 : vector<1x8x96xf32> to vector<8x96xf32>
    %cst_42 = arith.constant dense<0.000000e+00> : vector<8x96xf32>
    %124 = tpu.matmul %116, %9, %cst_42 {dimension_numbers = #tpu.dot_dimension_numbers<[1], [0], [0], [1], [0, 0, 1, 1], [], []>} : vector<8x32xf32>, vector<32x96xf32>, vector<8x96xf32> -> vector<8x96xf32>
    %125 = vector.extract_strided_slice %123 {offsets = [0, 0], sizes = [8, 32], strides = [1, 1]} : vector<8x96xf32> to vector<8x32xf32>
    %126 = vector.extract_strided_slice %124 {offsets = [0, 0], sizes = [8, 32], strides = [1, 1]} : vector<8x96xf32> to vector<8x32xf32>
    %127 = arith.addf %125, %126 : vector<8x32xf32>
    %128 = arith.negf %127 : vector<8x32xf32>
    %129 = math.exp %128 : vector<8x32xf32>
    %cst_43 = arith.constant 1.000000e+00 : f32
    %130 = vector.broadcast %cst_43 : f32 to vector<8x32xf32>
    %131 = arith.addf %130, %129 : vector<8x32xf32>
    %132 = arith.divf %130, %131 : vector<8x32xf32>
    %133 = vector.extract_strided_slice %123 {offsets = [0, 32], sizes = [8, 32], strides = [1, 1]} : vector<8x96xf32> to vector<8x32xf32>
    %134 = vector.extract_strided_slice %124 {offsets = [0, 32], sizes = [8, 32], strides = [1, 1]} : vector<8x96xf32> to vector<8x32xf32>
    %135 = arith.addf %133, %134 : vector<8x32xf32>
    %136 = arith.negf %135 : vector<8x32xf32>
    %137 = math.exp %136 : vector<8x32xf32>
    %cst_44 = arith.constant 1.000000e+00 : f32
    %138 = vector.broadcast %cst_44 : f32 to vector<8x32xf32>
    %139 = arith.addf %138, %137 : vector<8x32xf32>
    %140 = arith.divf %138, %139 : vector<8x32xf32>
    %141 = vector.extract_strided_slice %123 {offsets = [0, 64], sizes = [8, 32], strides = [1, 1]} : vector<8x96xf32> to vector<8x32xf32>
    %142 = vector.extract_strided_slice %124 {offsets = [0, 64], sizes = [8, 32], strides = [1, 1]} : vector<8x96xf32> to vector<8x32xf32>
    %143 = vector.broadcast %10 : vector<1x32xf32> to vector<8x32xf32>
    %144 = arith.addf %142, %143 : vector<8x32xf32>
    %145 = arith.mulf %132, %144 : vector<8x32xf32>
    %146 = arith.addf %141, %145 : vector<8x32xf32>
    %147 = math.tanh %146 : vector<8x32xf32>
    %cst_45 = arith.constant 1.000000e+00 : f32
    %148 = vector.broadcast %cst_45 : f32 to vector<8x32xf32>
    %149 = arith.subf %148, %140 : vector<8x32xf32>
    %150 = arith.mulf %149, %147 : vector<8x32xf32>
    %151 = arith.mulf %140, %116 : vector<8x32xf32>
    %152 = arith.addf %150, %151 : vector<8x32xf32>
    %153 = arith.index_cast %c3_i32 : i32 to index
    %c0_46 = arith.constant 0 : index
    %c0_47 = arith.constant 0 : index
    %154 = vector.load %arg11[%153, %c0_46, %c0_47] : memref<8x8x32xf32, #tpu.memory_space<vmem>>, vector<1x8x32xf32>
    %155 = vector.shape_cast %154 : vector<1x8x32xf32> to vector<8x32xf32>
    %156 = vector.shape_cast %152 : vector<8x32xf32> to vector<1x8x32xf32>
    tpu.vector_store %arg11[%153, %c0_46, %c0_47], %156 {strides = array<i32>} : memref<8x8x32xf32, #tpu.memory_space<vmem>>, vector<1x8x32xf32>,
    %c4_i32 = arith.constant 4 : i32
    %157 = arith.index_cast %c4_i32 : i32 to index
    %c0_48 = arith.constant 0 : index
    %c0_49 = arith.constant 0 : index
    %158 = vector.load %arg13[%157, %c0_48, %c0_49] : memref<8x8x96xf32, #tpu.memory_space<vmem>>, vector<1x8x96xf32>
    %159 = vector.shape_cast %158 : vector<1x8x96xf32> to vector<8x96xf32>
    %cst_50 = arith.constant dense<0.000000e+00> : vector<8x96xf32>
    %160 = tpu.matmul %152, %9, %cst_50 {dimension_numbers = #tpu.dot_dimension_numbers<[1], [0], [0], [1], [0, 0, 1, 1], [], []>} : vector<8x32xf32>, vector<32x96xf32>, vector<8x96xf32> -> vector<8x96xf32>
    %161 = vector.extract_strided_slice %159 {offsets = [0, 0], sizes = [8, 32], strides = [1, 1]} : vector<8x96xf32> to vector<8x32xf32>
    %162 = vector.extract_strided_slice %160 {offsets = [0, 0], sizes = [8, 32], strides = [1, 1]} : vector<8x96xf32> to vector<8x32xf32>
    %163 = arith.addf %161, %162 : vector<8x32xf32>
    %164 = arith.negf %163 : vector<8x32xf32>
    %165 = math.exp %164 : vector<8x32xf32>
    %cst_51 = arith.constant 1.000000e+00 : f32
    %166 = vector.broadcast %cst_51 : f32 to vector<8x32xf32>
    %167 = arith.addf %166, %165 : vector<8x32xf32>
    %168 = arith.divf %166, %167 : vector<8x32xf32>
    %169 = vector.extract_strided_slice %159 {offsets = [0, 32], sizes = [8, 32], strides = [1, 1]} : vector<8x96xf32> to vector<8x32xf32>
    %170 = vector.extract_strided_slice %160 {offsets = [0, 32], sizes = [8, 32], strides = [1, 1]} : vector<8x96xf32> to vector<8x32xf32>
    %171 = arith.addf %169, %170 : vector<8x32xf32>
    %172 = arith.negf %171 : vector<8x32xf32>
    %173 = math.exp %172 : vector<8x32xf32>
    %cst_52 = arith.constant 1.000000e+00 : f32
    %174 = vector.broadcast %cst_52 : f32 to vector<8x32xf32>
    %175 = arith.addf %174, %173 : vector<8x32xf32>
    %176 = arith.divf %174, %175 : vector<8x32xf32>
    %177 = vector.extract_strided_slice %159 {offsets = [0, 64], sizes = [8, 32], strides = [1, 1]} : vector<8x96xf32> to vector<8x32xf32>
    %178 = vector.extract_strided_slice %160 {offsets = [0, 64], sizes = [8, 32], strides = [1, 1]} : vector<8x96xf32> to vector<8x32xf32>
    %179 = vector.broadcast %10 : vector<1x32xf32> to vector<8x32xf32>
    %180 = arith.addf %178, %179 : vector<8x32xf32>
    %181 = arith.mulf %168, %180 : vector<8x32xf32>
    %182 = arith.addf %177, %181 : vector<8x32xf32>
    %183 = math.tanh %182 : vector<8x32xf32>
    %cst_53 = arith.constant 1.000000e+00 : f32
    %184 = vector.broadcast %cst_53 : f32 to vector<8x32xf32>
    %185 = arith.subf %184, %176 : vector<8x32xf32>
    %186 = arith.mulf %185, %183 : vector<8x32xf32>
    %187 = arith.mulf %176, %152 : vector<8x32xf32>
    %188 = arith.addf %186, %187 : vector<8x32xf32>
    %189 = arith.index_cast %c4_i32 : i32 to index
    %c0_54 = arith.constant 0 : index
    %c0_55 = arith.constant 0 : index
    %190 = vector.load %arg11[%189, %c0_54, %c0_55] : memref<8x8x32xf32, #tpu.memory_space<vmem>>, vector<1x8x32xf32>
    %191 = vector.shape_cast %190 : vector<1x8x32xf32> to vector<8x32xf32>
    %192 = vector.shape_cast %188 : vector<8x32xf32> to vector<1x8x32xf32>
    tpu.vector_store %arg11[%189, %c0_54, %c0_55], %192 {strides = array<i32>} : memref<8x8x32xf32, #tpu.memory_space<vmem>>, vector<1x8x32xf32>,
    %c5_i32 = arith.constant 5 : i32
    %193 = arith.index_cast %c5_i32 : i32 to index
    %c0_56 = arith.constant 0 : index
    %c0_57 = arith.constant 0 : index
    %194 = vector.load %arg13[%193, %c0_56, %c0_57] : memref<8x8x96xf32, #tpu.memory_space<vmem>>, vector<1x8x96xf32>
    %195 = vector.shape_cast %194 : vector<1x8x96xf32> to vector<8x96xf32>
    %cst_58 = arith.constant dense<0.000000e+00> : vector<8x96xf32>
    %196 = tpu.matmul %188, %9, %cst_58 {dimension_numbers = #tpu.dot_dimension_numbers<[1], [0], [0], [1], [0, 0, 1, 1], [], []>} : vector<8x32xf32>, vector<32x96xf32>, vector<8x96xf32> -> vector<8x96xf32>
    %197 = vector.extract_strided_slice %195 {offsets = [0, 0], sizes = [8, 32], strides = [1, 1]} : vector<8x96xf32> to vector<8x32xf32>
    %198 = vector.extract_strided_slice %196 {offsets = [0, 0], sizes = [8, 32], strides = [1, 1]} : vector<8x96xf32> to vector<8x32xf32>
    %199 = arith.addf %197, %198 : vector<8x32xf32>
    %200 = arith.negf %199 : vector<8x32xf32>
    %201 = math.exp %200 : vector<8x32xf32>
    %cst_59 = arith.constant 1.000000e+00 : f32
    %202 = vector.broadcast %cst_59 : f32 to vector<8x32xf32>
    %203 = arith.addf %202, %201 : vector<8x32xf32>
    %204 = arith.divf %202, %203 : vector<8x32xf32>
    %205 = vector.extract_strided_slice %195 {offsets = [0, 32], sizes = [8, 32], strides = [1, 1]} : vector<8x96xf32> to vector<8x32xf32>
    %206 = vector.extract_strided_slice %196 {offsets = [0, 32], sizes = [8, 32], strides = [1, 1]} : vector<8x96xf32> to vector<8x32xf32>
    %207 = arith.addf %205, %206 : vector<8x32xf32>
    %208 = arith.negf %207 : vector<8x32xf32>
    %209 = math.exp %208 : vector<8x32xf32>
    %cst_60 = arith.constant 1.000000e+00 : f32
    %210 = vector.broadcast %cst_60 : f32 to vector<8x32xf32>
    %211 = arith.addf %210, %209 : vector<8x32xf32>
    %212 = arith.divf %210, %211 : vector<8x32xf32>
    %213 = vector.extract_strided_slice %195 {offsets = [0, 64], sizes = [8, 32], strides = [1, 1]} : vector<8x96xf32> to vector<8x32xf32>
    %214 = vector.extract_strided_slice %196 {offsets = [0, 64], sizes = [8, 32], strides = [1, 1]} : vector<8x96xf32> to vector<8x32xf32>
    %215 = vector.broadcast %10 : vector<1x32xf32> to vector<8x32xf32>
    %216 = arith.addf %214, %215 : vector<8x32xf32>
    %217 = arith.mulf %204, %216 : vector<8x32xf32>
    %218 = arith.addf %213, %217 : vector<8x32xf32>
    %219 = math.tanh %218 : vector<8x32xf32>
    %cst_61 = arith.constant 1.000000e+00 : f32
    %220 = vector.broadcast %cst_61 : f32 to vector<8x32xf32>
    %221 = arith.subf %220, %212 : vector<8x32xf32>
    %222 = arith.mulf %221, %219 : vector<8x32xf32>
    %223 = arith.mulf %212, %188 : vector<8x32xf32>
    %224 = arith.addf %222, %223 : vector<8x32xf32>
    %225 = arith.index_cast %c5_i32 : i32 to index
    %c0_62 = arith.constant 0 : index
    %c0_63 = arith.constant 0 : index
    %226 = vector.load %arg11[%225, %c0_62, %c0_63] : memref<8x8x32xf32, #tpu.memory_space<vmem>>, vector<1x8x32xf32>
    %227 = vector.shape_cast %226 : vector<1x8x32xf32> to vector<8x32xf32>
    %228 = vector.shape_cast %224 : vector<8x32xf32> to vector<1x8x32xf32>
    tpu.vector_store %arg11[%225, %c0_62, %c0_63], %228 {strides = array<i32>} : memref<8x8x32xf32, #tpu.memory_space<vmem>>, vector<1x8x32xf32>,
    %c6_i32 = arith.constant 6 : i32
    %229 = arith.index_cast %c6_i32 : i32 to index
    %c0_64 = arith.constant 0 : index
    %c0_65 = arith.constant 0 : index
    %230 = vector.load %arg13[%229, %c0_64, %c0_65] : memref<8x8x96xf32, #tpu.memory_space<vmem>>, vector<1x8x96xf32>
    %231 = vector.shape_cast %230 : vector<1x8x96xf32> to vector<8x96xf32>
    %cst_66 = arith.constant dense<0.000000e+00> : vector<8x96xf32>
    %232 = tpu.matmul %224, %9, %cst_66 {dimension_numbers = #tpu.dot_dimension_numbers<[1], [0], [0], [1], [0, 0, 1, 1], [], []>} : vector<8x32xf32>, vector<32x96xf32>, vector<8x96xf32> -> vector<8x96xf32>
    %233 = vector.extract_strided_slice %231 {offsets = [0, 0], sizes = [8, 32], strides = [1, 1]} : vector<8x96xf32> to vector<8x32xf32>
    %234 = vector.extract_strided_slice %232 {offsets = [0, 0], sizes = [8, 32], strides = [1, 1]} : vector<8x96xf32> to vector<8x32xf32>
    %235 = arith.addf %233, %234 : vector<8x32xf32>
    %236 = arith.negf %235 : vector<8x32xf32>
    %237 = math.exp %236 : vector<8x32xf32>
    %cst_67 = arith.constant 1.000000e+00 : f32
    %238 = vector.broadcast %cst_67 : f32 to vector<8x32xf32>
    %239 = arith.addf %238, %237 : vector<8x32xf32>
    %240 = arith.divf %238, %239 : vector<8x32xf32>
    %241 = vector.extract_strided_slice %231 {offsets = [0, 32], sizes = [8, 32], strides = [1, 1]} : vector<8x96xf32> to vector<8x32xf32>
    %242 = vector.extract_strided_slice %232 {offsets = [0, 32], sizes = [8, 32], strides = [1, 1]} : vector<8x96xf32> to vector<8x32xf32>
    %243 = arith.addf %241, %242 : vector<8x32xf32>
    %244 = arith.negf %243 : vector<8x32xf32>
    %245 = math.exp %244 : vector<8x32xf32>
    %cst_68 = arith.constant 1.000000e+00 : f32
    %246 = vector.broadcast %cst_68 : f32 to vector<8x32xf32>
    %247 = arith.addf %246, %245 : vector<8x32xf32>
    %248 = arith.divf %246, %247 : vector<8x32xf32>
    %249 = vector.extract_strided_slice %231 {offsets = [0, 64], sizes = [8, 32], strides = [1, 1]} : vector<8x96xf32> to vector<8x32xf32>
    %250 = vector.extract_strided_slice %232 {offsets = [0, 64], sizes = [8, 32], strides = [1, 1]} : vector<8x96xf32> to vector<8x32xf32>
    %251 = vector.broadcast %10 : vector<1x32xf32> to vector<8x32xf32>
    %252 = arith.addf %250, %251 : vector<8x32xf32>
    %253 = arith.mulf %240, %252 : vector<8x32xf32>
    %254 = arith.addf %249, %253 : vector<8x32xf32>
    %255 = math.tanh %254 : vector<8x32xf32>
    %cst_69 = arith.constant 1.000000e+00 : f32
    %256 = vector.broadcast %cst_69 : f32 to vector<8x32xf32>
    %257 = arith.subf %256, %248 : vector<8x32xf32>
    %258 = arith.mulf %257, %255 : vector<8x32xf32>
    %259 = arith.mulf %248, %224 : vector<8x32xf32>
    %260 = arith.addf %258, %259 : vector<8x32xf32>
    %261 = arith.index_cast %c6_i32 : i32 to index
    %c0_70 = arith.constant 0 : index
    %c0_71 = arith.constant 0 : index
    %262 = vector.load %arg11[%261, %c0_70, %c0_71] : memref<8x8x32xf32, #tpu.memory_space<vmem>>, vector<1x8x32xf32>
    %263 = vector.shape_cast %262 : vector<1x8x32xf32> to vector<8x32xf32>
    %264 = vector.shape_cast %260 : vector<8x32xf32> to vector<1x8x32xf32>
    tpu.vector_store %arg11[%261, %c0_70, %c0_71], %264 {strides = array<i32>} : memref<8x8x32xf32, #tpu.memory_space<vmem>>, vector<1x8x32xf32>,
    %c7_i32 = arith.constant 7 : i32
    %265 = arith.index_cast %c7_i32 : i32 to index
    %c0_72 = arith.constant 0 : index
    %c0_73 = arith.constant 0 : index
    %266 = vector.load %arg13[%265, %c0_72, %c0_73] : memref<8x8x96xf32, #tpu.memory_space<vmem>>, vector<1x8x96xf32>
    %267 = vector.shape_cast %266 : vector<1x8x96xf32> to vector<8x96xf32>
    %cst_74 = arith.constant dense<0.000000e+00> : vector<8x96xf32>
    %268 = tpu.matmul %260, %9, %cst_74 {dimension_numbers = #tpu.dot_dimension_numbers<[1], [0], [0], [1], [0, 0, 1, 1], [], []>} : vector<8x32xf32>, vector<32x96xf32>, vector<8x96xf32> -> vector<8x96xf32>
    %269 = vector.extract_strided_slice %267 {offsets = [0, 0], sizes = [8, 32], strides = [1, 1]} : vector<8x96xf32> to vector<8x32xf32>
    %270 = vector.extract_strided_slice %268 {offsets = [0, 0], sizes = [8, 32], strides = [1, 1]} : vector<8x96xf32> to vector<8x32xf32>
    %271 = arith.addf %269, %270 : vector<8x32xf32>
    %272 = arith.negf %271 : vector<8x32xf32>
    %273 = math.exp %272 : vector<8x32xf32>
    %cst_75 = arith.constant 1.000000e+00 : f32
    %274 = vector.broadcast %cst_75 : f32 to vector<8x32xf32>
    %275 = arith.addf %274, %273 : vector<8x32xf32>
    %276 = arith.divf %274, %275 : vector<8x32xf32>
    %277 = vector.extract_strided_slice %267 {offsets = [0, 32], sizes = [8, 32], strides = [1, 1]} : vector<8x96xf32> to vector<8x32xf32>
    %278 = vector.extract_strided_slice %268 {offsets = [0, 32], sizes = [8, 32], strides = [1, 1]} : vector<8x96xf32> to vector<8x32xf32>
    %279 = arith.addf %277, %278 : vector<8x32xf32>
    %280 = arith.negf %279 : vector<8x32xf32>
    %281 = math.exp %280 : vector<8x32xf32>
    %cst_76 = arith.constant 1.000000e+00 : f32
    %282 = vector.broadcast %cst_76 : f32 to vector<8x32xf32>
    %283 = arith.addf %282, %281 : vector<8x32xf32>
    %284 = arith.divf %282, %283 : vector<8x32xf32>
    %285 = vector.extract_strided_slice %267 {offsets = [0, 64], sizes = [8, 32], strides = [1, 1]} : vector<8x96xf32> to vector<8x32xf32>
    %286 = vector.extract_strided_slice %268 {offsets = [0, 64], sizes = [8, 32], strides = [1, 1]} : vector<8x96xf32> to vector<8x32xf32>
    %287 = vector.broadcast %10 : vector<1x32xf32> to vector<8x32xf32>
    %288 = arith.addf %286, %287 : vector<8x32xf32>
    %289 = arith.mulf %276, %288 : vector<8x32xf32>
    %290 = arith.addf %285, %289 : vector<8x32xf32>
    %291 = math.tanh %290 : vector<8x32xf32>
    %cst_77 = arith.constant 1.000000e+00 : f32
    %292 = vector.broadcast %cst_77 : f32 to vector<8x32xf32>
    %293 = arith.subf %292, %284 : vector<8x32xf32>
    %294 = arith.mulf %293, %291 : vector<8x32xf32>
    %295 = arith.mulf %284, %260 : vector<8x32xf32>
    %296 = arith.addf %294, %295 : vector<8x32xf32>
    %297 = arith.index_cast %c7_i32 : i32 to index
    %c0_78 = arith.constant 0 : index
    %c0_79 = arith.constant 0 : index
    %298 = vector.load %arg11[%297, %c0_78, %c0_79] : memref<8x8x32xf32, #tpu.memory_space<vmem>>, vector<1x8x32xf32>
    %299 = vector.shape_cast %298 : vector<1x8x32xf32> to vector<8x32xf32>
    %300 = vector.shape_cast %296 : vector<8x32xf32> to vector<1x8x32xf32>
    tpu.vector_store %arg11[%297, %c0_78, %c0_79], %300 {strides = array<i32>} : memref<8x8x32xf32, #tpu.memory_space<vmem>>, vector<1x8x32xf32>,
    %c8_i32 = arith.constant 8 : i32
    %c0_80 = arith.constant 0 : index
    %c0_81 = arith.constant 0 : index
    %c0_82 = arith.constant 0 : index
    %301 = vector.load %arg12[%c0_80, %c0_81, %c0_82] : memref<2x8x32xf32, #tpu.memory_space<vmem>>, vector<1x8x32xf32>
    %302 = vector.shape_cast %301 : vector<1x8x32xf32> to vector<8x32xf32>
    %303 = vector.shape_cast %296 : vector<8x32xf32> to vector<1x8x32xf32>
    tpu.vector_store %arg12[%c0_80, %c0_81, %c0_82], %303 {strides = array<i32>} : memref<2x8x32xf32, #tpu.memory_space<vmem>>, vector<1x8x32xf32>,
    %c0_83 = arith.constant 0 : index
    %c0_84 = arith.constant 0 : index
    %c0_85 = arith.constant 0 : index
    %304 = vector.load %arg11[%c0_83, %c0_84, %c0_85] : memref<8x8x32xf32, #tpu.memory_space<vmem>>, vector<8x8x32xf32>
    %305 = vector.shape_cast %304 : vector<8x8x32xf32> to vector<64x32xf32>
    %c0_86 = arith.constant 0 : index
    %c0_87 = arith.constant 0 : index
    %306 = vector.load %arg7[%c0_86, %c0_87] : memref<32x96xf32, #tpu.memory_space<vmem>>, vector<32x96xf32>
    %cst_88 = arith.constant dense<0.000000e+00> : vector<64x96xf32>
    %307 = tpu.matmul %305, %306, %cst_88 {dimension_numbers = #tpu.dot_dimension_numbers<[1], [0], [0], [1], [0, 0, 1, 1], [], []>} : vector<64x32xf32>, vector<32x96xf32>, vector<64x96xf32> -> vector<64x96xf32>
    %c0_89 = arith.constant 0 : index
    %c0_90 = arith.constant 0 : index
    %308 = vector.load %arg9[%c0_89, %c0_90] : memref<1x96xf32, #tpu.memory_space<vmem>>, vector<1x96xf32>
    %309 = vector.broadcast %308 : vector<1x96xf32> to vector<64x96xf32>
    %310 = arith.addf %307, %309 : vector<64x96xf32>
    %311 = vector.shape_cast %310 : vector<64x96xf32> to vector<8x8x96xf32>
    %c0_91 = arith.constant 0 : index
    %c0_92 = arith.constant 0 : index
    %c0_93 = arith.constant 0 : index
    %312 = vector.load %arg13[%c0_91, %c0_92, %c0_93] : memref<8x8x96xf32, #tpu.memory_space<vmem>>, vector<8x8x96xf32>
    tpu.vector_store %arg13[%c0_91, %c0_92, %c0_93], %311 {strides = array<i32>} : memref<8x8x96xf32, #tpu.memory_space<vmem>>, vector<8x8x96xf32>,
    %c0_94 = arith.constant 0 : index
    %c0_95 = arith.constant 0 : index
    %313 = vector.load %arg8[%c0_94, %c0_95] : memref<32x96xf32, #tpu.memory_space<vmem>>, vector<32x96xf32>
    %c0_96 = arith.constant 0 : index
    %c0_97 = arith.constant 0 : index
    %314 = vector.load %arg10[%c0_96, %c0_97] : memref<1x32xf32, #tpu.memory_space<vmem>>, vector<1x32xf32>
    %c1 = arith.constant 1 : index
    %c0_98 = arith.constant 0 : index
    %c0_99 = arith.constant 0 : index
    %315 = vector.load %arg2[%c1, %c0_98, %c0_99] : memref<2x8x32xf32, #tpu.memory_space<vmem>>, vector<1x8x32xf32>
    %316 = vector.shape_cast %315 : vector<1x8x32xf32> to vector<8x32xf32>
    %c0_i32_100 = arith.constant 0 : i32
    %317 = arith.index_cast %c0_i32_100 : i32 to index
    %c0_101 = arith.constant 0 : index
    %c0_102 = arith.constant 0 : index
    %318 = vector.load %arg13[%317, %c0_101, %c0_102] : memref<8x8x96xf32, #tpu.memory_space<vmem>>, vector<1x8x96xf32>
    %319 = vector.shape_cast %318 : vector<1x8x96xf32> to vector<8x96xf32>
    %cst_103 = arith.constant dense<0.000000e+00> : vector<8x96xf32>
    %320 = tpu.matmul %316, %313, %cst_103 {dimension_numbers = #tpu.dot_dimension_numbers<[1], [0], [0], [1], [0, 0, 1, 1], [], []>} : vector<8x32xf32>, vector<32x96xf32>, vector<8x96xf32> -> vector<8x96xf32>
    %321 = vector.extract_strided_slice %319 {offsets = [0, 0], sizes = [8, 32], strides = [1, 1]} : vector<8x96xf32> to vector<8x32xf32>
    %322 = vector.extract_strided_slice %320 {offsets = [0, 0], sizes = [8, 32], strides = [1, 1]} : vector<8x96xf32> to vector<8x32xf32>
    %323 = arith.addf %321, %322 : vector<8x32xf32>
    %324 = arith.negf %323 : vector<8x32xf32>
    %325 = math.exp %324 : vector<8x32xf32>
    %cst_104 = arith.constant 1.000000e+00 : f32
    %326 = vector.broadcast %cst_104 : f32 to vector<8x32xf32>
    %327 = arith.addf %326, %325 : vector<8x32xf32>
    %328 = arith.divf %326, %327 : vector<8x32xf32>
    %329 = vector.extract_strided_slice %319 {offsets = [0, 32], sizes = [8, 32], strides = [1, 1]} : vector<8x96xf32> to vector<8x32xf32>
    %330 = vector.extract_strided_slice %320 {offsets = [0, 32], sizes = [8, 32], strides = [1, 1]} : vector<8x96xf32> to vector<8x32xf32>
    %331 = arith.addf %329, %330 : vector<8x32xf32>
    %332 = arith.negf %331 : vector<8x32xf32>
    %333 = math.exp %332 : vector<8x32xf32>
    %cst_105 = arith.constant 1.000000e+00 : f32
    %334 = vector.broadcast %cst_105 : f32 to vector<8x32xf32>
    %335 = arith.addf %334, %333 : vector<8x32xf32>
    %336 = arith.divf %334, %335 : vector<8x32xf32>
    %337 = vector.extract_strided_slice %319 {offsets = [0, 64], sizes = [8, 32], strides = [1, 1]} : vector<8x96xf32> to vector<8x32xf32>
    %338 = vector.extract_strided_slice %320 {offsets = [0, 64], sizes = [8, 32], strides = [1, 1]} : vector<8x96xf32> to vector<8x32xf32>
    %339 = vector.broadcast %314 : vector<1x32xf32> to vector<8x32xf32>
    %340 = arith.addf %338, %339 : vector<8x32xf32>
    %341 = arith.mulf %328, %340 : vector<8x32xf32>
    %342 = arith.addf %337, %341 : vector<8x32xf32>
    %343 = math.tanh %342 : vector<8x32xf32>
    %cst_106 = arith.constant 1.000000e+00 : f32
    %344 = vector.broadcast %cst_106 : f32 to vector<8x32xf32>
    %345 = arith.subf %344, %336 : vector<8x32xf32>
    %346 = arith.mulf %345, %343 : vector<8x32xf32>
    %347 = arith.mulf %336, %316 : vector<8x32xf32>
    %348 = arith.addf %346, %347 : vector<8x32xf32>
    %349 = arith.index_cast %c0_i32_100 : i32 to index
    %c0_107 = arith.constant 0 : index
    %c0_108 = arith.constant 0 : index
    %350 = vector.load %arg11[%349, %c0_107, %c0_108] : memref<8x8x32xf32, #tpu.memory_space<vmem>>, vector<1x8x32xf32>
    %351 = vector.shape_cast %350 : vector<1x8x32xf32> to vector<8x32xf32>
    %352 = vector.shape_cast %348 : vector<8x32xf32> to vector<1x8x32xf32>
    tpu.vector_store %arg11[%349, %c0_107, %c0_108], %352 {strides = array<i32>} : memref<8x8x32xf32, #tpu.memory_space<vmem>>, vector<1x8x32xf32>,
    %c1_i32_109 = arith.constant 1 : i32
    %353 = arith.index_cast %c1_i32_109 : i32 to index
    %c0_110 = arith.constant 0 : index
    %c0_111 = arith.constant 0 : index
    %354 = vector.load %arg13[%353, %c0_110, %c0_111] : memref<8x8x96xf32, #tpu.memory_space<vmem>>, vector<1x8x96xf32>
    %355 = vector.shape_cast %354 : vector<1x8x96xf32> to vector<8x96xf32>
    %cst_112 = arith.constant dense<0.000000e+00> : vector<8x96xf32>
    %356 = tpu.matmul %348, %313, %cst_112 {dimension_numbers = #tpu.dot_dimension_numbers<[1], [0], [0], [1], [0, 0, 1, 1], [], []>} : vector<8x32xf32>, vector<32x96xf32>, vector<8x96xf32> -> vector<8x96xf32>
    %357 = vector.extract_strided_slice %355 {offsets = [0, 0], sizes = [8, 32], strides = [1, 1]} : vector<8x96xf32> to vector<8x32xf32>
    %358 = vector.extract_strided_slice %356 {offsets = [0, 0], sizes = [8, 32], strides = [1, 1]} : vector<8x96xf32> to vector<8x32xf32>
    %359 = arith.addf %357, %358 : vector<8x32xf32>
    %360 = arith.negf %359 : vector<8x32xf32>
    %361 = math.exp %360 : vector<8x32xf32>
    %cst_113 = arith.constant 1.000000e+00 : f32
    %362 = vector.broadcast %cst_113 : f32 to vector<8x32xf32>
    %363 = arith.addf %362, %361 : vector<8x32xf32>
    %364 = arith.divf %362, %363 : vector<8x32xf32>
    %365 = vector.extract_strided_slice %355 {offsets = [0, 32], sizes = [8, 32], strides = [1, 1]} : vector<8x96xf32> to vector<8x32xf32>
    %366 = vector.extract_strided_slice %356 {offsets = [0, 32], sizes = [8, 32], strides = [1, 1]} : vector<8x96xf32> to vector<8x32xf32>
    %367 = arith.addf %365, %366 : vector<8x32xf32>
    %368 = arith.negf %367 : vector<8x32xf32>
    %369 = math.exp %368 : vector<8x32xf32>
    %cst_114 = arith.constant 1.000000e+00 : f32
    %370 = vector.broadcast %cst_114 : f32 to vector<8x32xf32>
    %371 = arith.addf %370, %369 : vector<8x32xf32>
    %372 = arith.divf %370, %371 : vector<8x32xf32>
    %373 = vector.extract_strided_slice %355 {offsets = [0, 64], sizes = [8, 32], strides = [1, 1]} : vector<8x96xf32> to vector<8x32xf32>
    %374 = vector.extract_strided_slice %356 {offsets = [0, 64], sizes = [8, 32], strides = [1, 1]} : vector<8x96xf32> to vector<8x32xf32>
    %375 = vector.broadcast %314 : vector<1x32xf32> to vector<8x32xf32>
    %376 = arith.addf %374, %375 : vector<8x32xf32>
    %377 = arith.mulf %364, %376 : vector<8x32xf32>
    %378 = arith.addf %373, %377 : vector<8x32xf32>
    %379 = math.tanh %378 : vector<8x32xf32>
    %cst_115 = arith.constant 1.000000e+00 : f32
    %380 = vector.broadcast %cst_115 : f32 to vector<8x32xf32>
    %381 = arith.subf %380, %372 : vector<8x32xf32>
    %382 = arith.mulf %381, %379 : vector<8x32xf32>
    %383 = arith.mulf %372, %348 : vector<8x32xf32>
    %384 = arith.addf %382, %383 : vector<8x32xf32>
    %385 = arith.index_cast %c1_i32_109 : i32 to index
    %c0_116 = arith.constant 0 : index
    %c0_117 = arith.constant 0 : index
    %386 = vector.load %arg11[%385, %c0_116, %c0_117] : memref<8x8x32xf32, #tpu.memory_space<vmem>>, vector<1x8x32xf32>
    %387 = vector.shape_cast %386 : vector<1x8x32xf32> to vector<8x32xf32>
    %388 = vector.shape_cast %384 : vector<8x32xf32> to vector<1x8x32xf32>
    tpu.vector_store %arg11[%385, %c0_116, %c0_117], %388 {strides = array<i32>} : memref<8x8x32xf32, #tpu.memory_space<vmem>>, vector<1x8x32xf32>,
    %c2_i32_118 = arith.constant 2 : i32
    %389 = arith.index_cast %c2_i32_118 : i32 to index
    %c0_119 = arith.constant 0 : index
    %c0_120 = arith.constant 0 : index
    %390 = vector.load %arg13[%389, %c0_119, %c0_120] : memref<8x8x96xf32, #tpu.memory_space<vmem>>, vector<1x8x96xf32>
    %391 = vector.shape_cast %390 : vector<1x8x96xf32> to vector<8x96xf32>
    %cst_121 = arith.constant dense<0.000000e+00> : vector<8x96xf32>
    %392 = tpu.matmul %384, %313, %cst_121 {dimension_numbers = #tpu.dot_dimension_numbers<[1], [0], [0], [1], [0, 0, 1, 1], [], []>} : vector<8x32xf32>, vector<32x96xf32>, vector<8x96xf32> -> vector<8x96xf32>
    %393 = vector.extract_strided_slice %391 {offsets = [0, 0], sizes = [8, 32], strides = [1, 1]} : vector<8x96xf32> to vector<8x32xf32>
    %394 = vector.extract_strided_slice %392 {offsets = [0, 0], sizes = [8, 32], strides = [1, 1]} : vector<8x96xf32> to vector<8x32xf32>
    %395 = arith.addf %393, %394 : vector<8x32xf32>
    %396 = arith.negf %395 : vector<8x32xf32>
    %397 = math.exp %396 : vector<8x32xf32>
    %cst_122 = arith.constant 1.000000e+00 : f32
    %398 = vector.broadcast %cst_122 : f32 to vector<8x32xf32>
    %399 = arith.addf %398, %397 : vector<8x32xf32>
    %400 = arith.divf %398, %399 : vector<8x32xf32>
    %401 = vector.extract_strided_slice %391 {offsets = [0, 32], sizes = [8, 32], strides = [1, 1]} : vector<8x96xf32> to vector<8x32xf32>
    %402 = vector.extract_strided_slice %392 {offsets = [0, 32], sizes = [8, 32], strides = [1, 1]} : vector<8x96xf32> to vector<8x32xf32>
    %403 = arith.addf %401, %402 : vector<8x32xf32>
    %404 = arith.negf %403 : vector<8x32xf32>
    %405 = math.exp %404 : vector<8x32xf32>
    %cst_123 = arith.constant 1.000000e+00 : f32
    %406 = vector.broadcast %cst_123 : f32 to vector<8x32xf32>
    %407 = arith.addf %406, %405 : vector<8x32xf32>
    %408 = arith.divf %406, %407 : vector<8x32xf32>
    %409 = vector.extract_strided_slice %391 {offsets = [0, 64], sizes = [8, 32], strides = [1, 1]} : vector<8x96xf32> to vector<8x32xf32>
    %410 = vector.extract_strided_slice %392 {offsets = [0, 64], sizes = [8, 32], strides = [1, 1]} : vector<8x96xf32> to vector<8x32xf32>
    %411 = vector.broadcast %314 : vector<1x32xf32> to vector<8x32xf32>
    %412 = arith.addf %410, %411 : vector<8x32xf32>
    %413 = arith.mulf %400, %412 : vector<8x32xf32>
    %414 = arith.addf %409, %413 : vector<8x32xf32>
    %415 = math.tanh %414 : vector<8x32xf32>
    %cst_124 = arith.constant 1.000000e+00 : f32
    %416 = vector.broadcast %cst_124 : f32 to vector<8x32xf32>
    %417 = arith.subf %416, %408 : vector<8x32xf32>
    %418 = arith.mulf %417, %415 : vector<8x32xf32>
    %419 = arith.mulf %408, %384 : vector<8x32xf32>
    %420 = arith.addf %418, %419 : vector<8x32xf32>
    %421 = arith.index_cast %c2_i32_118 : i32 to index
    %c0_125 = arith.constant 0 : index
    %c0_126 = arith.constant 0 : index
    %422 = vector.load %arg11[%421, %c0_125, %c0_126] : memref<8x8x32xf32, #tpu.memory_space<vmem>>, vector<1x8x32xf32>
    %423 = vector.shape_cast %422 : vector<1x8x32xf32> to vector<8x32xf32>
    %424 = vector.shape_cast %420 : vector<8x32xf32> to vector<1x8x32xf32>
    tpu.vector_store %arg11[%421, %c0_125, %c0_126], %424 {strides = array<i32>} : memref<8x8x32xf32, #tpu.memory_space<vmem>>, vector<1x8x32xf32>,
    %c3_i32_127 = arith.constant 3 : i32
    %425 = arith.index_cast %c3_i32_127 : i32 to index
    %c0_128 = arith.constant 0 : index
    %c0_129 = arith.constant 0 : index
    %426 = vector.load %arg13[%425, %c0_128, %c0_129] : memref<8x8x96xf32, #tpu.memory_space<vmem>>, vector<1x8x96xf32>
    %427 = vector.shape_cast %426 : vector<1x8x96xf32> to vector<8x96xf32>
    %cst_130 = arith.constant dense<0.000000e+00> : vector<8x96xf32>
    %428 = tpu.matmul %420, %313, %cst_130 {dimension_numbers = #tpu.dot_dimension_numbers<[1], [0], [0], [1], [0, 0, 1, 1], [], []>} : vector<8x32xf32>, vector<32x96xf32>, vector<8x96xf32> -> vector<8x96xf32>
    %429 = vector.extract_strided_slice %427 {offsets = [0, 0], sizes = [8, 32], strides = [1, 1]} : vector<8x96xf32> to vector<8x32xf32>
    %430 = vector.extract_strided_slice %428 {offsets = [0, 0], sizes = [8, 32], strides = [1, 1]} : vector<8x96xf32> to vector<8x32xf32>
    %431 = arith.addf %429, %430 : vector<8x32xf32>
    %432 = arith.negf %431 : vector<8x32xf32>
    %433 = math.exp %432 : vector<8x32xf32>
    %cst_131 = arith.constant 1.000000e+00 : f32
    %434 = vector.broadcast %cst_131 : f32 to vector<8x32xf32>
    %435 = arith.addf %434, %433 : vector<8x32xf32>
    %436 = arith.divf %434, %435 : vector<8x32xf32>
    %437 = vector.extract_strided_slice %427 {offsets = [0, 32], sizes = [8, 32], strides = [1, 1]} : vector<8x96xf32> to vector<8x32xf32>
    %438 = vector.extract_strided_slice %428 {offsets = [0, 32], sizes = [8, 32], strides = [1, 1]} : vector<8x96xf32> to vector<8x32xf32>
    %439 = arith.addf %437, %438 : vector<8x32xf32>
    %440 = arith.negf %439 : vector<8x32xf32>
    %441 = math.exp %440 : vector<8x32xf32>
    %cst_132 = arith.constant 1.000000e+00 : f32
    %442 = vector.broadcast %cst_132 : f32 to vector<8x32xf32>
    %443 = arith.addf %442, %441 : vector<8x32xf32>
    %444 = arith.divf %442, %443 : vector<8x32xf32>
    %445 = vector.extract_strided_slice %427 {offsets = [0, 64], sizes = [8, 32], strides = [1, 1]} : vector<8x96xf32> to vector<8x32xf32>
    %446 = vector.extract_strided_slice %428 {offsets = [0, 64], sizes = [8, 32], strides = [1, 1]} : vector<8x96xf32> to vector<8x32xf32>
    %447 = vector.broadcast %314 : vector<1x32xf32> to vector<8x32xf32>
    %448 = arith.addf %446, %447 : vector<8x32xf32>
    %449 = arith.mulf %436, %448 : vector<8x32xf32>
    %450 = arith.addf %445, %449 : vector<8x32xf32>
    %451 = math.tanh %450 : vector<8x32xf32>
    %cst_133 = arith.constant 1.000000e+00 : f32
    %452 = vector.broadcast %cst_133 : f32 to vector<8x32xf32>
    %453 = arith.subf %452, %444 : vector<8x32xf32>
    %454 = arith.mulf %453, %451 : vector<8x32xf32>
    %455 = arith.mulf %444, %420 : vector<8x32xf32>
    %456 = arith.addf %454, %455 : vector<8x32xf32>
    %457 = arith.index_cast %c3_i32_127 : i32 to index
    %c0_134 = arith.constant 0 : index
    %c0_135 = arith.constant 0 : index
    %458 = vector.load %arg11[%457, %c0_134, %c0_135] : memref<8x8x32xf32, #tpu.memory_space<vmem>>, vector<1x8x32xf32>
    %459 = vector.shape_cast %458 : vector<1x8x32xf32> to vector<8x32xf32>
    %460 = vector.shape_cast %456 : vector<8x32xf32> to vector<1x8x32xf32>
    tpu.vector_store %arg11[%457, %c0_134, %c0_135], %460 {strides = array<i32>} : memref<8x8x32xf32, #tpu.memory_space<vmem>>, vector<1x8x32xf32>,
    %c4_i32_136 = arith.constant 4 : i32
    %461 = arith.index_cast %c4_i32_136 : i32 to index
    %c0_137 = arith.constant 0 : index
    %c0_138 = arith.constant 0 : index
    %462 = vector.load %arg13[%461, %c0_137, %c0_138] : memref<8x8x96xf32, #tpu.memory_space<vmem>>, vector<1x8x96xf32>
    %463 = vector.shape_cast %462 : vector<1x8x96xf32> to vector<8x96xf32>
    %cst_139 = arith.constant dense<0.000000e+00> : vector<8x96xf32>
    %464 = tpu.matmul %456, %313, %cst_139 {dimension_numbers = #tpu.dot_dimension_numbers<[1], [0], [0], [1], [0, 0, 1, 1], [], []>} : vector<8x32xf32>, vector<32x96xf32>, vector<8x96xf32> -> vector<8x96xf32>
    %465 = vector.extract_strided_slice %463 {offsets = [0, 0], sizes = [8, 32], strides = [1, 1]} : vector<8x96xf32> to vector<8x32xf32>
    %466 = vector.extract_strided_slice %464 {offsets = [0, 0], sizes = [8, 32], strides = [1, 1]} : vector<8x96xf32> to vector<8x32xf32>
    %467 = arith.addf %465, %466 : vector<8x32xf32>
    %468 = arith.negf %467 : vector<8x32xf32>
    %469 = math.exp %468 : vector<8x32xf32>
    %cst_140 = arith.constant 1.000000e+00 : f32
    %470 = vector.broadcast %cst_140 : f32 to vector<8x32xf32>
    %471 = arith.addf %470, %469 : vector<8x32xf32>
    %472 = arith.divf %470, %471 : vector<8x32xf32>
    %473 = vector.extract_strided_slice %463 {offsets = [0, 32], sizes = [8, 32], strides = [1, 1]} : vector<8x96xf32> to vector<8x32xf32>
    %474 = vector.extract_strided_slice %464 {offsets = [0, 32], sizes = [8, 32], strides = [1, 1]} : vector<8x96xf32> to vector<8x32xf32>
    %475 = arith.addf %473, %474 : vector<8x32xf32>
    %476 = arith.negf %475 : vector<8x32xf32>
    %477 = math.exp %476 : vector<8x32xf32>
    %cst_141 = arith.constant 1.000000e+00 : f32
    %478 = vector.broadcast %cst_141 : f32 to vector<8x32xf32>
    %479 = arith.addf %478, %477 : vector<8x32xf32>
    %480 = arith.divf %478, %479 : vector<8x32xf32>
    %481 = vector.extract_strided_slice %463 {offsets = [0, 64], sizes = [8, 32], strides = [1, 1]} : vector<8x96xf32> to vector<8x32xf32>
    %482 = vector.extract_strided_slice %464 {offsets = [0, 64], sizes = [8, 32], strides = [1, 1]} : vector<8x96xf32> to vector<8x32xf32>
    %483 = vector.broadcast %314 : vector<1x32xf32> to vector<8x32xf32>
    %484 = arith.addf %482, %483 : vector<8x32xf32>
    %485 = arith.mulf %472, %484 : vector<8x32xf32>
    %486 = arith.addf %481, %485 : vector<8x32xf32>
    %487 = math.tanh %486 : vector<8x32xf32>
    %cst_142 = arith.constant 1.000000e+00 : f32
    %488 = vector.broadcast %cst_142 : f32 to vector<8x32xf32>
    %489 = arith.subf %488, %480 : vector<8x32xf32>
    %490 = arith.mulf %489, %487 : vector<8x32xf32>
    %491 = arith.mulf %480, %456 : vector<8x32xf32>
    %492 = arith.addf %490, %491 : vector<8x32xf32>
    %493 = arith.index_cast %c4_i32_136 : i32 to index
    %c0_143 = arith.constant 0 : index
    %c0_144 = arith.constant 0 : index
    %494 = vector.load %arg11[%493, %c0_143, %c0_144] : memref<8x8x32xf32, #tpu.memory_space<vmem>>, vector<1x8x32xf32>
    %495 = vector.shape_cast %494 : vector<1x8x32xf32> to vector<8x32xf32>
    %496 = vector.shape_cast %492 : vector<8x32xf32> to vector<1x8x32xf32>
    tpu.vector_store %arg11[%493, %c0_143, %c0_144], %496 {strides = array<i32>} : memref<8x8x32xf32, #tpu.memory_space<vmem>>, vector<1x8x32xf32>,
    %c5_i32_145 = arith.constant 5 : i32
    %497 = arith.index_cast %c5_i32_145 : i32 to index
    %c0_146 = arith.constant 0 : index
    %c0_147 = arith.constant 0 : index
    %498 = vector.load %arg13[%497, %c0_146, %c0_147] : memref<8x8x96xf32, #tpu.memory_space<vmem>>, vector<1x8x96xf32>
    %499 = vector.shape_cast %498 : vector<1x8x96xf32> to vector<8x96xf32>
    %cst_148 = arith.constant dense<0.000000e+00> : vector<8x96xf32>
    %500 = tpu.matmul %492, %313, %cst_148 {dimension_numbers = #tpu.dot_dimension_numbers<[1], [0], [0], [1], [0, 0, 1, 1], [], []>} : vector<8x32xf32>, vector<32x96xf32>, vector<8x96xf32> -> vector<8x96xf32>
    %501 = vector.extract_strided_slice %499 {offsets = [0, 0], sizes = [8, 32], strides = [1, 1]} : vector<8x96xf32> to vector<8x32xf32>
    %502 = vector.extract_strided_slice %500 {offsets = [0, 0], sizes = [8, 32], strides = [1, 1]} : vector<8x96xf32> to vector<8x32xf32>
    %503 = arith.addf %501, %502 : vector<8x32xf32>
    %504 = arith.negf %503 : vector<8x32xf32>
    %505 = math.exp %504 : vector<8x32xf32>
    %cst_149 = arith.constant 1.000000e+00 : f32
    %506 = vector.broadcast %cst_149 : f32 to vector<8x32xf32>
    %507 = arith.addf %506, %505 : vector<8x32xf32>
    %508 = arith.divf %506, %507 : vector<8x32xf32>
    %509 = vector.extract_strided_slice %499 {offsets = [0, 32], sizes = [8, 32], strides = [1, 1]} : vector<8x96xf32> to vector<8x32xf32>
    %510 = vector.extract_strided_slice %500 {offsets = [0, 32], sizes = [8, 32], strides = [1, 1]} : vector<8x96xf32> to vector<8x32xf32>
    %511 = arith.addf %509, %510 : vector<8x32xf32>
    %512 = arith.negf %511 : vector<8x32xf32>
    %513 = math.exp %512 : vector<8x32xf32>
    %cst_150 = arith.constant 1.000000e+00 : f32
    %514 = vector.broadcast %cst_150 : f32 to vector<8x32xf32>
    %515 = arith.addf %514, %513 : vector<8x32xf32>
    %516 = arith.divf %514, %515 : vector<8x32xf32>
    %517 = vector.extract_strided_slice %499 {offsets = [0, 64], sizes = [8, 32], strides = [1, 1]} : vector<8x96xf32> to vector<8x32xf32>
    %518 = vector.extract_strided_slice %500 {offsets = [0, 64], sizes = [8, 32], strides = [1, 1]} : vector<8x96xf32> to vector<8x32xf32>
    %519 = vector.broadcast %314 : vector<1x32xf32> to vector<8x32xf32>
    %520 = arith.addf %518, %519 : vector<8x32xf32>
    %521 = arith.mulf %508, %520 : vector<8x32xf32>
    %522 = arith.addf %517, %521 : vector<8x32xf32>
    %523 = math.tanh %522 : vector<8x32xf32>
    %cst_151 = arith.constant 1.000000e+00 : f32
    %524 = vector.broadcast %cst_151 : f32 to vector<8x32xf32>
    %525 = arith.subf %524, %516 : vector<8x32xf32>
    %526 = arith.mulf %525, %523 : vector<8x32xf32>
    %527 = arith.mulf %516, %492 : vector<8x32xf32>
    %528 = arith.addf %526, %527 : vector<8x32xf32>
    %529 = arith.index_cast %c5_i32_145 : i32 to index
    %c0_152 = arith.constant 0 : index
    %c0_153 = arith.constant 0 : index
    %530 = vector.load %arg11[%529, %c0_152, %c0_153] : memref<8x8x32xf32, #tpu.memory_space<vmem>>, vector<1x8x32xf32>
    %531 = vector.shape_cast %530 : vector<1x8x32xf32> to vector<8x32xf32>
    %532 = vector.shape_cast %528 : vector<8x32xf32> to vector<1x8x32xf32>
    tpu.vector_store %arg11[%529, %c0_152, %c0_153], %532 {strides = array<i32>} : memref<8x8x32xf32, #tpu.memory_space<vmem>>, vector<1x8x32xf32>,
    %c6_i32_154 = arith.constant 6 : i32
    %533 = arith.index_cast %c6_i32_154 : i32 to index
    %c0_155 = arith.constant 0 : index
    %c0_156 = arith.constant 0 : index
    %534 = vector.load %arg13[%533, %c0_155, %c0_156] : memref<8x8x96xf32, #tpu.memory_space<vmem>>, vector<1x8x96xf32>
    %535 = vector.shape_cast %534 : vector<1x8x96xf32> to vector<8x96xf32>
    %cst_157 = arith.constant dense<0.000000e+00> : vector<8x96xf32>
    %536 = tpu.matmul %528, %313, %cst_157 {dimension_numbers = #tpu.dot_dimension_numbers<[1], [0], [0], [1], [0, 0, 1, 1], [], []>} : vector<8x32xf32>, vector<32x96xf32>, vector<8x96xf32> -> vector<8x96xf32>
    %537 = vector.extract_strided_slice %535 {offsets = [0, 0], sizes = [8, 32], strides = [1, 1]} : vector<8x96xf32> to vector<8x32xf32>
    %538 = vector.extract_strided_slice %536 {offsets = [0, 0], sizes = [8, 32], strides = [1, 1]} : vector<8x96xf32> to vector<8x32xf32>
    %539 = arith.addf %537, %538 : vector<8x32xf32>
    %540 = arith.negf %539 : vector<8x32xf32>
    %541 = math.exp %540 : vector<8x32xf32>
    %cst_158 = arith.constant 1.000000e+00 : f32
    %542 = vector.broadcast %cst_158 : f32 to vector<8x32xf32>
    %543 = arith.addf %542, %541 : vector<8x32xf32>
    %544 = arith.divf %542, %543 : vector<8x32xf32>
    %545 = vector.extract_strided_slice %535 {offsets = [0, 32], sizes = [8, 32], strides = [1, 1]} : vector<8x96xf32> to vector<8x32xf32>
    %546 = vector.extract_strided_slice %536 {offsets = [0, 32], sizes = [8, 32], strides = [1, 1]} : vector<8x96xf32> to vector<8x32xf32>
    %547 = arith.addf %545, %546 : vector<8x32xf32>
    %548 = arith.negf %547 : vector<8x32xf32>
    %549 = math.exp %548 : vector<8x32xf32>
    %cst_159 = arith.constant 1.000000e+00 : f32
    %550 = vector.broadcast %cst_159 : f32 to vector<8x32xf32>
    %551 = arith.addf %550, %549 : vector<8x32xf32>
    %552 = arith.divf %550, %551 : vector<8x32xf32>
    %553 = vector.extract_strided_slice %535 {offsets = [0, 64], sizes = [8, 32], strides = [1, 1]} : vector<8x96xf32> to vector<8x32xf32>
    %554 = vector.extract_strided_slice %536 {offsets = [0, 64], sizes = [8, 32], strides = [1, 1]} : vector<8x96xf32> to vector<8x32xf32>
    %555 = vector.broadcast %314 : vector<1x32xf32> to vector<8x32xf32>
    %556 = arith.addf %554, %555 : vector<8x32xf32>
    %557 = arith.mulf %544, %556 : vector<8x32xf32>
    %558 = arith.addf %553, %557 : vector<8x32xf32>
    %559 = math.tanh %558 : vector<8x32xf32>
    %cst_160 = arith.constant 1.000000e+00 : f32
    %560 = vector.broadcast %cst_160 : f32 to vector<8x32xf32>
    %561 = arith.subf %560, %552 : vector<8x32xf32>
    %562 = arith.mulf %561, %559 : vector<8x32xf32>
    %563 = arith.mulf %552, %528 : vector<8x32xf32>
    %564 = arith.addf %562, %563 : vector<8x32xf32>
    %565 = arith.index_cast %c6_i32_154 : i32 to index
    %c0_161 = arith.constant 0 : index
    %c0_162 = arith.constant 0 : index
    %566 = vector.load %arg11[%565, %c0_161, %c0_162] : memref<8x8x32xf32, #tpu.memory_space<vmem>>, vector<1x8x32xf32>
    %567 = vector.shape_cast %566 : vector<1x8x32xf32> to vector<8x32xf32>
    %568 = vector.shape_cast %564 : vector<8x32xf32> to vector<1x8x32xf32>
    tpu.vector_store %arg11[%565, %c0_161, %c0_162], %568 {strides = array<i32>} : memref<8x8x32xf32, #tpu.memory_space<vmem>>, vector<1x8x32xf32>,
    %c7_i32_163 = arith.constant 7 : i32
    %569 = arith.index_cast %c7_i32_163 : i32 to index
    %c0_164 = arith.constant 0 : index
    %c0_165 = arith.constant 0 : index
    %570 = vector.load %arg13[%569, %c0_164, %c0_165] : memref<8x8x96xf32, #tpu.memory_space<vmem>>, vector<1x8x96xf32>
    %571 = vector.shape_cast %570 : vector<1x8x96xf32> to vector<8x96xf32>
    %cst_166 = arith.constant dense<0.000000e+00> : vector<8x96xf32>
    %572 = tpu.matmul %564, %313, %cst_166 {dimension_numbers = #tpu.dot_dimension_numbers<[1], [0], [0], [1], [0, 0, 1, 1], [], []>} : vector<8x32xf32>, vector<32x96xf32>, vector<8x96xf32> -> vector<8x96xf32>
    %573 = vector.extract_strided_slice %571 {offsets = [0, 0], sizes = [8, 32], strides = [1, 1]} : vector<8x96xf32> to vector<8x32xf32>
    %574 = vector.extract_strided_slice %572 {offsets = [0, 0], sizes = [8, 32], strides = [1, 1]} : vector<8x96xf32> to vector<8x32xf32>
    %575 = arith.addf %573, %574 : vector<8x32xf32>
    %576 = arith.negf %575 : vector<8x32xf32>
    %577 = math.exp %576 : vector<8x32xf32>
    %cst_167 = arith.constant 1.000000e+00 : f32
    %578 = vector.broadcast %cst_167 : f32 to vector<8x32xf32>
    %579 = arith.addf %578, %577 : vector<8x32xf32>
    %580 = arith.divf %578, %579 : vector<8x32xf32>
    %581 = vector.extract_strided_slice %571 {offsets = [0, 32], sizes = [8, 32], strides = [1, 1]} : vector<8x96xf32> to vector<8x32xf32>
    %582 = vector.extract_strided_slice %572 {offsets = [0, 32], sizes = [8, 32], strides = [1, 1]} : vector<8x96xf32> to vector<8x32xf32>
    %583 = arith.addf %581, %582 : vector<8x32xf32>
    %584 = arith.negf %583 : vector<8x32xf32>
    %585 = math.exp %584 : vector<8x32xf32>
    %cst_168 = arith.constant 1.000000e+00 : f32
    %586 = vector.broadcast %cst_168 : f32 to vector<8x32xf32>
    %587 = arith.addf %586, %585 : vector<8x32xf32>
    %588 = arith.divf %586, %587 : vector<8x32xf32>
    %589 = vector.extract_strided_slice %571 {offsets = [0, 64], sizes = [8, 32], strides = [1, 1]} : vector<8x96xf32> to vector<8x32xf32>
    %590 = vector.extract_strided_slice %572 {offsets = [0, 64], sizes = [8, 32], strides = [1, 1]} : vector<8x96xf32> to vector<8x32xf32>
    %591 = vector.broadcast %314 : vector<1x32xf32> to vector<8x32xf32>
    %592 = arith.addf %590, %591 : vector<8x32xf32>
    %593 = arith.mulf %580, %592 : vector<8x32xf32>
    %594 = arith.addf %589, %593 : vector<8x32xf32>
    %595 = math.tanh %594 : vector<8x32xf32>
    %cst_169 = arith.constant 1.000000e+00 : f32
    %596 = vector.broadcast %cst_169 : f32 to vector<8x32xf32>
    %597 = arith.subf %596, %588 : vector<8x32xf32>
    %598 = arith.mulf %597, %595 : vector<8x32xf32>
    %599 = arith.mulf %588, %564 : vector<8x32xf32>
    %600 = arith.addf %598, %599 : vector<8x32xf32>
    %601 = arith.index_cast %c7_i32_163 : i32 to index
    %c0_170 = arith.constant 0 : index
    %c0_171 = arith.constant 0 : index
    %602 = vector.load %arg11[%601, %c0_170, %c0_171] : memref<8x8x32xf32, #tpu.memory_space<vmem>>, vector<1x8x32xf32>
    %603 = vector.shape_cast %602 : vector<1x8x32xf32> to vector<8x32xf32>
    %604 = vector.shape_cast %600 : vector<8x32xf32> to vector<1x8x32xf32>
    tpu.vector_store %arg11[%601, %c0_170, %c0_171], %604 {strides = array<i32>} : memref<8x8x32xf32, #tpu.memory_space<vmem>>, vector<1x8x32xf32>,
    %c8_i32_172 = arith.constant 8 : i32
    %c1_173 = arith.constant 1 : index
    %c0_174 = arith.constant 0 : index
    %c0_175 = arith.constant 0 : index
    %605 = vector.load %arg12[%c1_173, %c0_174, %c0_175] : memref<2x8x32xf32, #tpu.memory_space<vmem>>, vector<1x8x32xf32>
    %606 = vector.shape_cast %605 : vector<1x8x32xf32> to vector<8x32xf32>
    %607 = vector.shape_cast %600 : vector<8x32xf32> to vector<1x8x32xf32>
    tpu.vector_store %arg12[%c1_173, %c0_174, %c0_175], %607 {strides = array<i32>} : memref<2x8x32xf32, #tpu.memory_space<vmem>>, vector<1x8x32xf32>,
    return
  }
  func.func @transform_0(%arg0: i32) -> (i32, i32, i32) {
    %c0_i32 = arith.constant 0 : i32
    %c0_i32_0 = arith.constant 0 : i32
    %c0_i32_1 = arith.constant 0 : i32
    return %c0_i32, %arg0, %c0_i32_0 : i32, i32, i32
  }
  func.func @transform_1(%arg0: i32) -> (i32, i32, i32) {
    %c0_i32 = arith.constant 0 : i32
    %c0_i32_0 = arith.constant 0 : i32
    %c0_i32_1 = arith.constant 0 : i32
    return %c0_i32, %arg0, %c0_i32_0 : i32, i32, i32
  }
  func.func @transform_2(%arg0: i32) -> (i32, i32) {
    %c0_i32 = arith.constant 0 : i32
    %c0_i32_0 = arith.constant 0 : i32
    %c0_i32_1 = arith.constant 0 : i32
    return %c0_i32, %c0_i32_0 : i32, i32
  }
  func.func @transform_3(%arg0: i32) -> (i32, i32) {
    %c0_i32 = arith.constant 0 : i32
    %c0_i32_0 = arith.constant 0 : i32
    %c0_i32_1 = arith.constant 0 : i32
    return %c0_i32, %c0_i32_0 : i32, i32
  }
  func.func @transform_4(%arg0: i32) -> (i32, i32) {
    %c0_i32 = arith.constant 0 : i32
    %c0_i32_0 = arith.constant 0 : i32
    %c0_i32_1 = arith.constant 0 : i32
    return %c0_i32, %c0_i32_0 : i32, i32
  }
  func.func @transform_5(%arg0: i32) -> (i32, i32) {
    %c0_i32 = arith.constant 0 : i32
    %c0_i32_0 = arith.constant 0 : i32
    %c0_i32_1 = arith.constant 0 : i32
    return %c0_i32, %c0_i32_0 : i32, i32
  }
  func.func @transform_6(%arg0: i32) -> (i32, i32) {
    %c0_i32 = arith.constant 0 : i32
    %c0_i32_0 = arith.constant 0 : i32
    %c0_i32_1 = arith.constant 0 : i32
    return %c0_i32, %c0_i32_0 : i32, i32
  }
  func.func @transform_7(%arg0: i32) -> (i32, i32) {
    %c0_i32 = arith.constant 0 : i32
    %c0_i32_0 = arith.constant 0 : i32
    %c0_i32_1 = arith.constant 0 : i32
    return %c0_i32, %c0_i32_0 : i32, i32
  }
  func.func @transform_8(%arg0: i32) -> (i32, i32) {
    %c0_i32 = arith.constant 0 : i32
    %c0_i32_0 = arith.constant 0 : i32
    %c0_i32_1 = arith.constant 0 : i32
    return %c0_i32, %c0_i32_0 : i32, i32
  }
  func.func @transform_9(%arg0: i32) -> (i32, i32) {
    %c0_i32 = arith.constant 0 : i32
    %c0_i32_0 = arith.constant 0 : i32
    %c0_i32_1 = arith.constant 0 : i32
    return %c0_i32, %c0_i32_0 : i32, i32
  }
  func.func @transform_10(%arg0: i32) -> (i32, i32, i32) {
    %c0_i32 = arith.constant 0 : i32
    %c0_i32_0 = arith.constant 0 : i32
    %c0_i32_1 = arith.constant 0 : i32
    return %c0_i32, %arg0, %c0_i32_0 : i32, i32, i32
  }
  func.func @transform_11(%arg0: i32) -> (i32, i32, i32) {
    %c0_i32 = arith.constant 0 : i32
    %c0_i32_0 = arith.constant 0 : i32
    %c0_i32_1 = arith.constant 0 : i32
    return %c0_i32, %arg0, %c0_i32_0 : i32, i32, i32
  }
}

</mosaic_0001>

<bundles_post_ra>
// kernel: rnn_decoder_forward.3
= control target key start
LH: loop header
LB: loop body
LE: loop exit
PB: predicated region body
PF: predicated region fallthrough
CT: control target
= control target key end

     0   :  { %s246_s0 = inlined_call_operand.vmem [shape: f32[64,32], index: 0, kind: input, shape index: {}]   ;;  %s247_s1 = inlined_call_operand.vmem [shape: f32[32,128], index: 1, kind: input, shape index: {}]   ;;  %s248_s2 = inlined_call_operand.vmem [shape: f32[1,128], index: 2, kind: input, shape index: {}]   ;;  %s249_s3 = inlined_call_operand.hbm [shape: f32[64,128], index: 3, kind: output, shape index: {}]  }
   0x1   :  { %v26_v0 = vld [vmem:[%s247_s1 + $0x18] sm:$0xff]  ;;  %v25_v1 = vld [vmem:[%s247_s1 + $0x10] sm:$0xff]  ;;  %v24_v2 = vld [vmem:[%s247_s1 + $0x8] sm:$0xff] }
   0x2   :  { %132 = vmatpush.msra.mxu2 %v26_v0  ;;  %133 = vmatpush.msra.mxu3 %v26_v0  ;;  %v23_v3 = vld [vmem:[%s247_s1] sm:$0xff] }
   0x3   :  { %68 = vmatpush.msra.mxu0 %v26_v0  ;;  %131 = vmatpush.msra.mxu1 %v26_v0 }
   0x4   :  { %135 = vmatpush.msra.mxu2 %v25_v1  ;;  %136 = vmatpush.msra.mxu3 %v25_v1 }
   0x5   :  { %69 = vmatpush.msra.mxu0 %v25_v1  ;;  %134 = vmatpush.msra.mxu1 %v25_v1 }
   0x6   :  { %8 = vsyncpa [#allocation3], 0  ;;  %138 = vmatpush.msra.mxu2 %v24_v2  ;;  %139 = vmatpush.msra.mxu3 %v24_v2  ;;  %v19_v4 = vld [vmem:[%s246_s0 + $0x20] sm:$0xff]  ;;  %vm31_vm0 = vcmask 261120   ;;  %v21_v5 = vld [vmem:[%s246_s0 + $0x30] sm:$0xff]  ;;  %s111_s12 = sshll.u32 %s249_s3, 4  ;;  %s112_s12 = int_to_ptr.hbm [resolvable:$true] %s111_s12 }
   0x7   :  { %70 = vmatpush.msra.mxu0 %v24_v2  ;;  %137 = vmatpush.msra.mxu1 %v24_v2  ;;  %v15_v6 = vld [vmem:[%s246_s0] sm:$0xff]  ;;  %v17_v7 = vld [vmem:[%s246_s0 + $0x10] sm:$0xff]  ;;  %v20_v8 = vld [vmem:[%s246_s0 + $0x28] sm:$0xff]  ;;  %s174_s13 = smov 128   ;;  %s175_s14 = smov 8  }
   0x8   :  { %141 = vmatpush.msra.mxu2 %v23_v3  ;;  %142 = vmatpush.msra.mxu3 %v23_v3  ;;  %v22_v9 = vld [vmem:[%s246_s0 + $0x38] sm:$0xff]  ;;  %v16_v10 = vld [vmem:[%s246_s0 + $0x8] sm:$0xff]  ;;  %v146_v12 = vld [vmem:[%s248_s2] ss:$0 sm:$0xff] }
   0x9   :  { %127 = vmatmul.msk.f32.vlgmr.msra.gmra.mxu2 %vm31_vm0, %v19_v4  ;;  %129 = vmatmul.msk.f32.vlgmr.msra.gmra.mxu3 %vm31_vm0, %v21_v5  ;;  %v18_v11 = vld [vmem:[%s246_s0 + $0x18] sm:$0xff]  ;;  %s173_s0 = smov [#allocation2]  }
   0xa   :  { %71 = vmatpush.msra.mxu0 %v23_v3  ;;  %140 = vmatpush.msra.mxu1 %v23_v3  ;;  %s109_s10 = sshll.u32 %s173_s0, 4  ;;  %s110_s10 = int_to_ptr.vmem [resolvable:$true] %s109_s10 }
   0xb   :  { %123 = vmatmul.msk.f32.vlgmr.msra.gmra.mxu0 %vm31_vm0, %v15_v6  ;;  %125 = vmatmul.msk.f32.vlgmr.msra.gmra.mxu1 %vm31_vm0, %v17_v7 }
  0x11   :  { %128 = vmatmul.msk.f32.gmra.mxu2 %vm31_vm0, %v20_v8  ;;  %130 = vmatmul.msk.f32.gmra.mxu3 %vm31_vm0, %v22_v9 }
  0x13   :  { %124 = vmatmul.msk.f32.gmra.mxu0 %vm31_vm0, %v16_v10  ;;  %126 = vmatmul.msk.f32.gmra.mxu1 %vm31_vm0, %v18_v11 }
  0x88   :  { %v73_v13 = vpop.f32.mrf.mxu0  ;;  %v79_v14 = vpop.f32.mrf.mxu1 }
  0x89   :  { %v74_v15 = vadd.f32 %v146_v12, %v73_v13  ;;  %v80_v16 = vadd.f32 %v146_v12, %v79_v14 }
  0x8b   :  { %97 = vst [vmem:[#allocation2] sm:$0xff] %v74_v15 }
  0x8c   :  { %99 = vst [vmem:[#allocation2 + $0x10] sm:$0xff] %v80_v16  ;;  %v85_v17 = vpop.f32.mrf.mxu2  ;;  %v91_v18 = vpop.f32.mrf.mxu3 }
  0x8d   :  { %v86_v19 = vadd.f32 %v146_v12, %v85_v17  ;;  %v92_v20 = vadd.f32 %v146_v12, %v91_v18 }
  0x8f   :  { %101 = vst [vmem:[#allocation2 + $0x20] sm:$0xff] %v86_v19 }
  0x90   :  { %103 = vst [vmem:[#allocation2 + $0x30] sm:$0xff] %v92_v20  ;;  %v76_v21 = vpop.f32.mrf.mxu0  ;;  %v82_v22 = vpop.f32.mrf.mxu1 }
  0x91   :  { %v77_v23 = vadd.f32 %v146_v12, %v76_v21  ;;  %v83_v24 = vadd.f32 %v146_v12, %v82_v22 }
  0x93   :  { %98 = vst [vmem:[#allocation2 + $0x8] sm:$0xff] %v77_v23 }
  0x94   :  { %100 = vst [vmem:[#allocation2 + $0x18] sm:$0xff] %v83_v24  ;;  %v88_v25 = vpop.f32.mrf.mxu2  ;;  %v94_v26 = vpop.f32.mrf.mxu3 }
  0x95   :  { %v89_v27 = vadd.f32 %v146_v12, %v88_v25  ;;  %v95_v28 = vadd.f32 %v146_v12, %v94_v26 }
  0x97   :  { %102 = vst [vmem:[#allocation2 + $0x28] sm:$0xff] %v89_v27 }
  0x98   :  { %104 = vst [vmem:[#allocation2 + $0x38] sm:$0xff] %v95_v28 }
  0x99   :  { %117 = dma.vmem_to_hbm [thread:$0]  %s110_s10, 1024, %s112_s12, [#allocation3], %s174_s13, %s174_s13, %s175_s14  }
  0x9a   :  { %171 = dma.done.wait [#allocation3], 1024  }
  0x9b   :  { %172 = vsyncadd [#allocation3], 4294966272 }
  0x9c   :  { %122 = vsyncpa [#allocation3], 1 }

// kernel: rnn_decoder_forward.2
= control target key start
LH: loop header
LB: loop body
LE: loop exit
PB: predicated region body
PF: predicated region fallthrough
CT: control target
= control target key end

     0   :  { %s1572_s18 = smov 32   ;;  %vm54_vm0 = vcmask 261120   ;;  %s2079_s0 = inlined_call_operand.vmem [shape: f32[8,8,32], index: 0, kind: input, shape index: {}]   ;;  %s2080_s1 = inlined_call_operand.vmem [shape: f32[2,8,32], index: 1, kind: input, shape index: {}]   ;;  %s2081_s2 = inlined_call_operand.vmem [shape: f32[32,96], index: 2, kind: input, shape index: {}]   ;;  %s2082_s3 = inlined_call_operand.vmem [shape: f32[32,96], index: 3, kind: input, shape index: {}]   ;;  %s2083_s4 = inlined_call_operand.vmem [shape: f32[1,96], index: 4, kind: input, shape index: {}]   ;;  %s2084_s5 = inlined_call_operand.vmem [shape: f32[1,32], index: 5, kind: input, shape index: {}]   ;;  %s2085_s6 = inlined_call_operand.vmem [shape: f32[32,96], index: 6, kind: input, shape index: {}]   ;;  %s2086_s7 = inlined_call_operand.vmem [shape: f32[32,96], index: 7, kind: input, shape index: {}]   ;;  %s2087_s8 = inlined_call_operand.vmem [shape: f32[1,96], index: 8, kind: input, shape index: {}]   ;;  %s2088_s9 = inlined_call_operand.vmem [shape: f32[1,32], index: 9, kind: input, shape index: {}]   ;;  %s2089_s10 = inlined_call_operand.vmem [shape: f32[8,8,32], index: 10, kind: output, shape index: {0}]   ;;  %s2090_s11 = inlined_call_operand.hbm [shape: f32[2,8,32], index: 11, kind: output, shape index: {1}]  }
   0x1   :  { %v49_v0 = vld [vmem:[%s2081_s2 + $0x18] sm:$0xff]  ;;  %v48_v2 = vld [vmem:[%s2081_s2 + $0x10] sm:$0xff]  ;;  %v47_v4 = vld [vmem:[%s2081_s2 + $0x8] sm:$0xff] }
   0x2   :  { %v1644_v1 = vld [vmem:[%s2082_s3 + $0x18] sm:$0xff]  ;;  %91 = vmatpush.msra.mxu0 %v49_v0  ;;  %v1653_v3 = vld [vmem:[%s2082_s3 + $0x10] sm:$0xff]  ;;  %v1661_v5 = vld [vmem:[%s2082_s3 + $0x8] sm:$0xff] }
   0x3   :  { %151 = vmatpush.msra.mxu1 %v1644_v1  ;;  %v46_v6 = vld [vmem:[%s2081_s2] sm:$0xff]  ;;  %228 = vmatpush.msra.mxu2 %v1644_v1 }
   0x4   :  { %v1669_v7 = vld [vmem:[%s2082_s3] sm:$0xff]  ;;  %92 = vmatpush.msra.mxu0 %v48_v2 }
   0x5   :  { %152 = vmatpush.msra.mxu1 %v1653_v3  ;;  %v134_v8 = vld [vmem:[%s2080_s1] sm:$0xff]  ;;  %229 = vmatpush.msra.mxu2 %v1653_v3 }
   0x6   :  { %v1445_v9 = vld [vmem:[%s2084_s5] ss:$0 sm:$0xff]  ;;  %202 = vrot.lane.b32.xlu2 %v134_v8, %s1572_s18  ;;  %93 = vmatpush.msra.mxu0 %v47_v4 }
   0x7   :  { %153 = vmatpush.msra.mxu1 %v1661_v5  ;;  %v38_v10 = vld [vmem:[%s2079_s0] sm:$0xff] }
   0x8   :  { %17 = vsyncpa [#allocation4], 0  ;;  %s1573_s19 = smov 64   ;;  %230 = vmatpush.msra.mxu2 %v1661_v5  ;;  %94 = vmatpush.msra.mxu0 %v46_v6  ;;  %v1706_v11 = vld [vmem:[%s2083_s4] ss:$0 sm:$0xff]  ;;  %vm120_vm1 = vcmask 785408  }
   0x9   :  { %181 = vrot.lane.b32.xlu0 %v1445_v9, %s1573_s19  ;;  %154 = vmatpush.msra.mxu1 %v1669_v7  ;;  %s1574_s4 = smov 96   ;;  %v39_v37 = vld [vmem:[%s2079_s0 + $0x8] sm:$0xff]  ;;  %v714_v44 = vld [vmem:[%s2085_s6 + $0x18] sm:$0xff]  ;;  %v713_v45 = vld [vmem:[%s2085_s6 + $0x10] sm:$0xff]  ;;  %s1362_s16 = sshll.u32 %s2090_s11, 4  ;;  %s1363_s16 = int_to_ptr.hbm [resolvable:$true] %s1362_s16 }
   0xa   :  { %1376 = vmatmul.msk.f32.vlgmr.msra.gmra.mxu0 %vm54_vm0, %v38_v10  ;;  %1384 = vmatmul.msk.f32.vlgmr.msra.gmra.mxu1 %vm54_vm0, %v134_v8  ;;  %v712_v46 = vld [vmem:[%s2085_s6 + $0x8] sm:$0xff]  ;;  %v711_v47 = vld [vmem:[%s2085_s6] sm:$0xff]  ;;  %s1576_s2 = smov 128  }
   0xb   :  { %231 = vmatpush.msra.mxu2 %v1669_v7  ;;  %298 = vmatpush.msrb.mxu1 %v1644_v1  ;;  %v1753_v54 = vld [vmem:[%s2087_s8] ss:$0 sm:$0xff] }
   0xc   :  { %755 = vmatpush.msra.mxu3 %v714_v44 }
   0xd   :  { %438 = vmatpush.msrb.mxu2 %v1644_v1  ;;  %299 = vmatpush.msrb.mxu1 %v1653_v3 }
   0xe   :  { %756 = vmatpush.msra.mxu3 %v713_v45 }
   0xf   :  { %439 = vmatpush.msrb.mxu2 %v1653_v3  ;;  %300 = vmatpush.msrb.mxu1 %v1661_v5 }
  0x10   :  { %757 = vmatpush.msra.mxu3 %v712_v46 }
  0x11   :  { %440 = vmatpush.msrb.mxu2 %v1661_v5  ;;  %301 = vmatpush.msrb.mxu1 %v1669_v7 }
  0x12   :  { %1377 = vmatmul.msk.f32.gmra.mxu0 %vm54_vm0, %v39_v37  ;;  %758 = vmatpush.msra.mxu3 %v711_v47 }
  0x13   :  { %368 = vmatpush.msra.mxu1 %v1644_v1  ;;  %441 = vmatpush.msrb.mxu2 %v1669_v7 }
  0x15   :  { %369 = vmatpush.msra.mxu1 %v1653_v3 }
  0x17   :  { %370 = vmatpush.msra.mxu1 %v1661_v5 }
  0x19   :  { %371 = vmatpush.msra.mxu1 %v1669_v7 }
  0x60   :  { %v203_v38 = vpop.permute.xlu2 %202 }
  0x7b   :  { %v1708_v12 = vpop.permute.xlu0 %181 }
  0x87   :  { %v96_v13 = vpop.f32.mrf.mxu0  ;;  %v156_v14 = vpop.f32.mrf.mxu1 }
  0x88   :  { %v97_v15 = vadd.f32 %v1706_v11, %v96_v13  ;;  %v184_v16 = vadd.f32 %v1708_v12, %v156_v14 }
  0x8a   :  { %121 = vst.msk [vmem:[#allocation2] sm:$0xff] %vm120_vm1, %v97_v15  ;;  %186 = vrot.lane.b32.xlu0 %v184_v16, %s1573_s19 }
  0x8f   :  { %v99_v49 = vpop.f32.mrf.mxu0 }
  0x90   :  { %v100_v50 = vadd.f32 %v1706_v11, %v99_v49 }
  0x91   :  { %v135_v17 = vld [vmem:[#allocation2] sm:$0xff] }
  0x92   :  { %v159_v18 = vadd.f32 %v156_v14, %v135_v17  ;;  %122 = vst.msk [vmem:[#allocation2 + $0x8] sm:$0xff] %vm120_vm1, %v100_v50 }
  0x94   :  { %v1385_v19 = vmul.f32 -1.442695, %v159_v18 }
  0x96   :  { %1449 = vpow2.f32 %v1385_v19  ;;  %v40_v19 = vld [vmem:[%s2079_s0 + $0x10] sm:$0xff] }
  0x97   :  { %1378 = vmatmul.msk.f32.gmra.mxu0 %vm54_vm0, %v40_v19 }
  0x99   :  { %v213_v57 = vld [vmem:[#allocation2 + $0x8] sm:$0xff] }
  0x9c   :  { %v1450_v20 = vpop.eup %1449 }
  0x9d   :  { %v163_v21 = vadd.f32 1.0, %v1450_v20 }
  0x9f   :  { %1451 = vrcp.f32 %v163_v21  ;;  %v175_v27 = vand.u32 2147483648, %v163_v21  ;;  %vm169_vm3 = vweird.f32 %v163_v21  ;;  %v173_v28 = vand.u32 2147483647, %v163_v21 }
  0xa1   :  { %v176_v30 = vor.u32 1.1754944e-38, %v175_v27  ;;  %vm174_vm5 = vcmp.eq.f32.partialorder %v173_v28, 8.507059e+37 }
  0xa5   :  { %v1452_v22 = vpop.eup %1451 }
  0xa6   :  { %v165_v23 = vmul.f32 %v1452_v22, %v163_v21  ;;  %vm170_vm2 = vweird.f32 %v1452_v22 }
  0xa7   :  { %vm171_vm4 = vmor %vm169_vm3, %vm170_vm2 }
  0xa8   :  { %v166_v24 = vsub.f32 1.0, %v165_v23 }
  0xaa   :  { %v167_v25 = vmul.f32 %v1452_v22, %v166_v24 }
  0xac   :  { %v168_v26 = vadd.f32 %v1452_v22, %v167_v25 }
  0xae   :  { %v172_v29 = vsel %vm171_vm4, %v1452_v22, %v168_v26 }
  0xaf   :  { %v177_v31 = vsel %vm174_vm5, %v176_v30, %v172_v29 }
  0xb0   :  { %v196_v39 = vsub.f32 1.0, %v177_v31  ;;  %v205_v41 = vmul.f32 %v203_v38, %v177_v31 }
  0xfc   :  { %v187_v32 = vpop.permute.xlu0 %186 }
  0xfd   :  { %v189_v33 = vmul.f32 %v187_v32, %v177_v31 }
  0xff   :  { %191 = vrot.lane.b32.xlu1 %v189_v33, %s1573_s19 }
 0x114   :  { %v102_v25 = vpop.f32.mrf.mxu0 }
 0x115   :  { %v103_v26 = vadd.f32 %v1706_v11, %v102_v25 }
 0x117   :  { %123 = vst.msk [vmem:[#allocation2 + $0x10] sm:$0xff] %vm120_vm1, %v103_v26 }
 0x11e   :  { %v283_v33 = vld [vmem:[#allocation2 + $0x10] sm:$0xff] }
 0x171   :  { %v192_v34 = vpop.permute.xlu1 %191 }
 0x172   :  { %v194_v35 = vadd.f32 %v192_v34, %v135_v17 }
 0x174   :  { %1453 = vtanh.f32 %v194_v35 }
 0x17a   :  { %v1454_v36 = vpop.eup %1453 }
 0x17b   :  { %198 = vrot.lane.b32.xlu1 %v1454_v36, %s1574_s4 }
 0x1ed   :  { %v199_v40 = vpop.permute.xlu1 %198 }
 0x1ee   :  { %v201_v42 = vmul.f32 %v199_v40, %v196_v39 }
 0x1f0   :  { %v206_v43 = vadd.f32 %v205_v41, %v201_v42 }
 0x1f2   :  { %208 = vrot.lane.b32.xlu2 %v206_v43, %s1574_s4 }
 0x24c   :  { %v209_v48 = vpop.permute.xlu2 %208 }
 0x24d   :  { %211 = vst.msk [vmem:[%s2089_s10] sm:$0xff] %vm54_vm0, %v209_v48  ;;  %1386 = vmatmul.msk.f32.vlgmr.msra.gmra.mxu2 %vm54_vm0, %v209_v48 }
 0x24e   :  { %508 = vmatpush.msra.mxu2 %v1644_v1 }
 0x250   :  { %509 = vmatpush.msra.mxu2 %v1653_v3 }
 0x252   :  { %510 = vmatpush.msra.mxu2 %v1661_v5 }
 0x254   :  { %v703_v51 = vld [vmem:[%s2089_s10] sm:$0xff]  ;;  %511 = vmatpush.msra.mxu2 %v1669_v7 }
 0x255   :  { %1407 = vmatmul.msk.f32.vlgmr.msra.gmra.mxu3 %vm54_vm0, %v703_v51 }
 0x2d0   :  { %v233_v52 = vpop.f32.mrf.mxu2 }
 0x2d1   :  { %v256_v53 = vadd.f32 %v233_v52, %v1708_v12  ;;  %v236_v58 = vadd.f32 %v233_v52, %v213_v57 }
 0x2d3   :  { %258 = vrot.lane.b32.xlu0 %v256_v53, %s1573_s19  ;;  %v1387_v59 = vmul.f32 -1.442695, %v236_v58  ;;  %v41_v53 = vld [vmem:[%s2079_s0 + $0x18] sm:$0xff] }
 0x2d4   :  { %1379 = vmatmul.msk.f32.gmra.mxu0 %vm54_vm0, %v41_v53 }
 0x2d5   :  { %1455 = vpow2.f32 %v1387_v59 }
 0x2d8   :  { %v760_v55 = vpop.f32.mrf.mxu3 }
 0x2d9   :  { %v761_v56 = vadd.f32 %v1753_v54, %v760_v55 }
 0x2db   :  { %784 = vst.msk [vmem:[#allocation2] sm:$0xff] %vm120_vm1, %v761_v56  ;;  %v1456_v60 = vpop.eup %1455 }
 0x2dc   :  { %v240_v61 = vadd.f32 1.0, %v1456_v60 }
 0x2de   :  { %1457 = vrcp.f32 %v240_v61  ;;  %v252_v6 = vand.u32 2147483648, %v240_v61  ;;  %vm246_vm7 = vweird.f32 %v240_v61  ;;  %v250_v8 = vand.u32 2147483647, %v240_v61 }
 0x2e0   :  { %v253_v10 = vor.u32 1.1754944e-38, %v252_v6  ;;  %vm251_vm9 = vcmp.eq.f32.partialorder %v250_v8, 8.507059e+37 }
 0x2e4   :  { %v1458_v62 = vpop.eup %1457 }
 0x2e5   :  { %v242_v63 = vmul.f32 %v1458_v62, %v240_v61  ;;  %vm247_vm6 = vweird.f32 %v1458_v62 }
 0x2e6   :  { %vm248_vm8 = vmor %vm246_vm7, %vm247_vm6 }
 0x2e7   :  { %v243_v0 = vsub.f32 1.0, %v242_v63 }
 0x2e9   :  { %v244_v2 = vmul.f32 %v1458_v62, %v243_v0 }
 0x2eb   :  { %v245_v4 = vadd.f32 %v1458_v62, %v244_v2 }
 0x2ed   :  { %v249_v9 = vsel %vm248_vm8, %v1458_v62, %v245_v4 }
 0x2ee   :  { %v254_v14 = vsel %vm251_vm9, %v253_v10, %v249_v9 }
 0x2ef   :  { %v268_v20 = vsub.f32 1.0, %v254_v14  ;;  %v274_v22 = vmul.f32 %v254_v14, %v206_v43 }
 0x345   :  { %v259_v13 = vpop.permute.xlu0 %258 }
 0x346   :  { %v261_v15 = vmul.f32 %v259_v13, %v254_v14 }
 0x348   :  { %263 = vrot.lane.b32.xlu1 %v261_v15, %s1573_s19 }
 0x351   :  { %v105_v60 = vpop.f32.mrf.mxu0 }
 0x352   :  { %v106_v61 = vadd.f32 %v1706_v11, %v105_v60 }
 0x354   :  { %124 = vst.msk [vmem:[#allocation2 + $0x18] sm:$0xff] %vm120_vm1, %v106_v61  ;;  %v43_v61 = vld [vmem:[%s2079_s0 + $0x28] sm:$0xff] }
 0x35b   :  { %v353_v8 = vld [vmem:[#allocation2 + $0x18] sm:$0xff] }
 0x3ba   :  { %v264_v16 = vpop.permute.xlu1 %263 }
 0x3bb   :  { %v266_v17 = vadd.f32 %v264_v16, %v213_v57 }
 0x3bd   :  { %1459 = vtanh.f32 %v266_v17 }
 0x3c3   :  { %v1460_v18 = vpop.eup %1459 }
 0x3c4   :  { %270 = vrot.lane.b32.xlu2 %v1460_v18, %s1574_s4 }
 0x41e   :  { %v271_v21 = vpop.permute.xlu2 %270 }
 0x41f   :  { %v273_v23 = vmul.f32 %v271_v21, %v268_v20 }
 0x421   :  { %v275_v24 = vadd.f32 %v274_v22, %v273_v23 }
 0x423   :  { %277 = vrot.lane.b32.xlu0 %v275_v24, %s1574_s4 }
 0x495   :  { %v278_v27 = vpop.permute.xlu0 %277 }
 0x496   :  { %1388 = vst.msk [vmem:[%s2089_s10 + $0x8] sm:$0xff] %vm54_vm0, %v278_v27  ;;  %1389 = vmatmul.msk.f32.vlgmr.msrb.gmra.mxu1 %vm54_vm0, %v278_v27 }
 0x497   :  { %578 = vmatpush.msrb.mxu1 %v1644_v1 }
 0x499   :  { %579 = vmatpush.msrb.mxu1 %v1653_v3 }
 0x49b   :  { %580 = vmatpush.msrb.mxu1 %v1661_v5 }
 0x49d   :  { %v704_v28 = vld [vmem:[%s2089_s10 + $0x8] sm:$0xff]  ;;  %581 = vmatpush.msrb.mxu1 %v1669_v7 }
 0x49e   :  { %1408 = vmatmul.msk.f32.gmra.mxu3 %vm54_vm0, %v704_v28 }
 0x513   :  { %v303_v29 = vpop.f32.mrf.mxu1 }
 0x514   :  { %v326_v30 = vadd.f32 %v303_v29, %v1708_v12  ;;  %v306_v34 = vadd.f32 %v303_v29, %v283_v33 }
 0x516   :  { %328 = vrot.lane.b32.xlu1 %v326_v30, %s1573_s19  ;;  %v1390_v35 = vmul.f32 -1.442695, %v306_v34  ;;  %v42_v30 = vld [vmem:[%s2079_s0 + $0x20] sm:$0xff] }
 0x517   :  { %1380 = vmatmul.msk.f32.gmra.mxu0 %vm54_vm0, %v42_v30 }
 0x518   :  { %1461 = vpow2.f32 %v1390_v35 }
 0x51e   :  { %v1462_v36 = vpop.eup %1461 }
 0x51f   :  { %v310_v37 = vadd.f32 1.0, %v1462_v36  ;;  %1381 = vmatmul.msk.f32.gmra.mxu0 %vm54_vm0, %v43_v61 }
 0x521   :  { %v763_v31 = vpop.f32.mrf.mxu3  ;;  %1463 = vrcp.f32 %v310_v37  ;;  %v322_v43 = vand.u32 2147483648, %v310_v37  ;;  %vm316_vm11 = vweird.f32 %v310_v37  ;;  %v320_v44 = vand.u32 2147483647, %v310_v37 }
 0x522   :  { %v764_v32 = vadd.f32 %v1753_v54, %v763_v31 }
 0x523   :  { %v323_v46 = vor.u32 1.1754944e-38, %v322_v43  ;;  %vm321_vm13 = vcmp.eq.f32.partialorder %v320_v44, 8.507059e+37 }
 0x524   :  { %785 = vst.msk [vmem:[#allocation2 + $0x8] sm:$0xff] %vm120_vm1, %v764_v32 }
 0x527   :  { %v1464_v38 = vpop.eup %1463 }
 0x528   :  { %v312_v39 = vmul.f32 %v1464_v38, %v310_v37  ;;  %vm317_vm10 = vweird.f32 %v1464_v38 }
 0x529   :  { %vm318_vm12 = vmor %vm316_vm11, %vm317_vm10 }
 0x52a   :  { %v313_v40 = vsub.f32 1.0, %v312_v39 }
 0x52c   :  { %v314_v41 = vmul.f32 %v1464_v38, %v313_v40 }
 0x52e   :  { %v315_v42 = vadd.f32 %v1464_v38, %v314_v41 }
 0x530   :  { %v319_v45 = vsel %vm318_vm12, %v1464_v38, %v315_v42 }
 0x531   :  { %v324_v48 = vsel %vm321_vm13, %v323_v46, %v319_v45 }
 0x532   :  { %v338_v55 = vsub.f32 1.0, %v324_v48  ;;  %v344_v57 = vmul.f32 %v324_v48, %v275_v24 }
 0x588   :  { %v329_v47 = vpop.permute.xlu1 %328 }
 0x589   :  { %v331_v49 = vmul.f32 %v329_v47, %v324_v48 }
 0x58b   :  { %333 = vrot.lane.b32.xlu2 %v331_v49, %s1573_s19 }
 0x594   :  { %v108_v37 = vpop.f32.mrf.mxu0 }
 0x595   :  { %v109_v38 = vadd.f32 %v1706_v11, %v108_v37  ;;  %v44_v37 = vld [vmem:[%s2079_s0 + $0x30] sm:$0xff] }
 0x596   :  { %1382 = vmatmul.msk.f32.gmra.mxu0 %vm54_vm0, %v44_v37 }
 0x597   :  { %125 = vst.msk [vmem:[#allocation2 + $0x20] sm:$0xff] %vm120_vm1, %v109_v38 }
 0x5e5   :  { %v334_v50 = vpop.permute.xlu2 %333 }
 0x5e6   :  { %v336_v51 = vadd.f32 %v334_v50, %v283_v33 }
 0x5e8   :  { %1465 = vtanh.f32 %v336_v51 }
 0x5ee   :  { %v1466_v52 = vpop.eup %1465 }
 0x5ef   :  { %340 = vrot.lane.b32.xlu0 %v1466_v52, %s1574_s4 }
 0x661   :  { %v341_v56 = vpop.permute.xlu0 %340 }
 0x662   :  { %v343_v58 = vmul.f32 %v341_v56, %v338_v55 }
 0x664   :  { %v345_v59 = vadd.f32 %v344_v57, %v343_v58 }
 0x666   :  { %347 = vrot.lane.b32.xlu1 %v345_v59, %s1574_s4 }
 0x6d8   :  { %v348_v62 = vpop.permute.xlu1 %347 }
 0x6d9   :  { %1391 = vst.msk [vmem:[%s2089_s10 + $0x10] sm:$0xff] %vm54_vm0, %v348_v62  ;;  %1392 = vmatmul.msk.f32.vlgmr.msra.gmra.mxu1 %vm54_vm0, %v348_v62 }
 0x6e0   :  { %v705_v63 = vld [vmem:[%s2089_s10 + $0x10] sm:$0xff] }
 0x6e1   :  { %1409 = vmatmul.msk.f32.gmra.mxu3 %vm54_vm0, %v705_v63 }
 0x756   :  { %v373_v0 = vpop.f32.mrf.mxu1 }
 0x757   :  { %v396_v2 = vadd.f32 %v373_v0, %v1708_v12  ;;  %v376_v9 = vadd.f32 %v373_v0, %v353_v8 }
 0x759   :  { %398 = vrot.lane.b32.xlu2 %v396_v2, %s1573_s19  ;;  %v1393_v10 = vmul.f32 -1.442695, %v376_v9 }
 0x75b   :  { %1467 = vpow2.f32 %v1393_v10 }
 0x761   :  { %v1468_v13 = vpop.eup %1467 }
 0x762   :  { %v380_v14 = vadd.f32 1.0, %v1468_v13 }
 0x764   :  { %v766_v4 = vpop.f32.mrf.mxu3  ;;  %1469 = vrcp.f32 %v380_v14  ;;  %v392_v20 = vand.u32 2147483648, %v380_v14  ;;  %vm386_vm15 = vweird.f32 %v380_v14  ;;  %v390_v21 = vand.u32 2147483647, %v380_v14 }
 0x765   :  { %v767_v6 = vadd.f32 %v1753_v54, %v766_v4 }
 0x766   :  { %v393_v23 = vor.u32 1.1754944e-38, %v392_v20  ;;  %vm391_vm3 = vcmp.eq.f32.partialorder %v390_v21, 8.507059e+37 }
 0x767   :  { %786 = vst.msk [vmem:[#allocation2 + $0x10] sm:$0xff] %vm120_vm1, %v767_v6  ;;  %v111_v6 = vpop.f32.mrf.mxu0 }
 0x76a   :  { %v1470_v15 = vpop.eup %1469 }
 0x76b   :  { %v382_v16 = vmul.f32 %v1470_v15, %v380_v14  ;;  %vm387_vm14 = vweird.f32 %v1470_v15 }
 0x76c   :  { %vm388_vm2 = vmor %vm386_vm15, %vm387_vm14 }
 0x76d   :  { %v383_v17 = vsub.f32 1.0, %v382_v16 }
 0x76f   :  { %v384_v18 = vmul.f32 %v1470_v15, %v383_v17 }
 0x771   :  { %v385_v19 = vadd.f32 %v1470_v15, %v384_v18 }
 0x773   :  { %v389_v22 = vsel %vm388_vm2, %v1470_v15, %v385_v19 }
 0x774   :  { %v394_v25 = vsel %vm391_vm3, %v393_v23, %v389_v22 }
 0x775   :  { %v408_v31 = vsub.f32 1.0, %v394_v25  ;;  %v414_v33 = vmul.f32 %v394_v25, %v345_v59 }
 0x7b3   :  { %v399_v24 = vpop.permute.xlu2 %398 }
 0x7b4   :  { %v401_v26 = vmul.f32 %v399_v24, %v394_v25 }
 0x7b6   :  { %403 = vrot.lane.b32.xlu0 %v401_v26, %s1573_s19 }
 0x828   :  { %v404_v27 = vpop.permute.xlu0 %403 }
 0x829   :  { %v406_v28 = vadd.f32 %v404_v27, %v353_v8  ;;  %v112_v8 = vadd.f32 %v1706_v11, %v111_v6 }
 0x82b   :  { %1471 = vtanh.f32 %v406_v28  ;;  %126 = vst.msk [vmem:[#allocation2 + $0x28] sm:$0xff] %vm120_vm1, %v112_v8 }
 0x831   :  { %v1472_v29 = vpop.eup %1471 }
 0x832   :  { %410 = vrot.lane.b32.xlu1 %v1472_v29, %s1574_s4  ;;  %v493_v17 = vld [vmem:[#allocation2 + $0x28] sm:$0xff] }
 0x8a4   :  { %v411_v32 = vpop.permute.xlu1 %410 }
 0x8a5   :  { %v413_v34 = vmul.f32 %v411_v32, %v408_v31 }
 0x8a7   :  { %v415_v35 = vadd.f32 %v414_v33, %v413_v34 }
 0x8a9   :  { %417 = vrot.lane.b32.xlu2 %v415_v35, %s1574_s4 }
 0x903   :  { %v418_v36 = vpop.permute.xlu2 %417 }
 0x904   :  { %1394 = vst.msk [vmem:[%s2089_s10 + $0x18] sm:$0xff] %vm54_vm0, %v418_v36  ;;  %1395 = vmatmul.msk.f32.vlgmr.msrb.gmra.mxu2 %vm54_vm0, %v418_v36 }
 0x905   :  { %648 = vmatpush.msrb.mxu2 %v1644_v1 }
 0x907   :  { %649 = vmatpush.msrb.mxu2 %v1653_v3 }
 0x909   :  { %650 = vmatpush.msrb.mxu2 %v1661_v5  ;;  %v423_v5 = vld [vmem:[#allocation2 + $0x20] sm:$0xff] }
 0x90b   :  { %v706_v39 = vld [vmem:[%s2089_s10 + $0x18] sm:$0xff]  ;;  %651 = vmatpush.msrb.mxu2 %v1669_v7 }
 0x90c   :  { %1410 = vmatmul.msk.f32.gmra.mxu3 %vm54_vm0, %v706_v39 }
 0x987   :  { %v443_v40 = vpop.f32.mrf.mxu2 }
 0x988   :  { %v466_v1 = vadd.f32 %v443_v40, %v1708_v12  ;;  %v446_v42 = vadd.f32 %v443_v40, %v423_v5 }
 0x98a   :  { %468 = vrot.lane.b32.xlu0 %v466_v1, %s1573_s19  ;;  %v1396_v43 = vmul.f32 -1.442695, %v446_v42  ;;  %v1878_v42 = vld [vmem:[%s2086_s7 + $0x8] sm:$0xff] }
 0x98c   :  { %1473 = vpow2.f32 %v1396_v43  ;;  %v1885_v43 = vld [vmem:[%s2086_s7] sm:$0xff] }
 0x98f   :  { %v769_v3 = vpop.f32.mrf.mxu3 }
 0x990   :  { %v770_v41 = vadd.f32 %v1753_v54, %v769_v3 }
 0x992   :  { %787 = vst.msk [vmem:[#allocation2 + $0x18] sm:$0xff] %vm120_vm1, %v770_v41  ;;  %v1474_v44 = vpop.eup %1473  ;;  %v1866_v41 = vld [vmem:[%s2086_s7 + $0x18] sm:$0xff] }
 0x993   :  { %v450_v45 = vadd.f32 1.0, %v1474_v44  ;;  %815 = vmatpush.msra.mxu1 %v1866_v41  ;;  %v1448_v44 = vld [vmem:[%s2088_s9] ss:$0 sm:$0xff] }
 0x995   :  { %1475 = vrcp.f32 %v450_v45  ;;  %v462_v50 = vand.u32 2147483648, %v450_v45  ;;  %vm456_vm5 = vweird.f32 %v450_v45  ;;  %v460_v51 = vand.u32 2147483647, %v450_v45 }
 0x997   :  { %v463_v53 = vor.u32 1.1754944e-38, %v462_v50  ;;  %vm461_vm7 = vcmp.eq.f32.partialorder %v460_v51, 8.507059e+37 }
 0x99b   :  { %v1476_v7 = vpop.eup %1475 }
 0x99c   :  { %v452_v46 = vmul.f32 %v1476_v7, %v450_v45  ;;  %vm457_vm4 = vweird.f32 %v1476_v7  ;;  %v114_v45 = vpop.f32.mrf.mxu0 }
 0x99d   :  { %vm458_vm6 = vmor %vm456_vm5, %vm457_vm4 }
 0x99e   :  { %v453_v47 = vsub.f32 1.0, %v452_v46 }
 0x9a0   :  { %v454_v48 = vmul.f32 %v1476_v7, %v453_v47  ;;  %v1907_v47 = vld [vmem:[%s2080_s1 + $0x8] sm:$0xff] }
 0x9a2   :  { %v455_v49 = vadd.f32 %v1476_v7, %v454_v48 }
 0x9a4   :  { %v459_v52 = vsel %vm458_vm6, %v1476_v7, %v455_v49  ;;  %v115_v7 = vadd.f32 %v1706_v11, %v114_v45 }
 0x9a5   :  { %v464_v56 = vsel %vm461_vm7, %v463_v53, %v459_v52 }
 0x9a6   :  { %v478_v62 = vsub.f32 1.0, %v464_v56  ;;  %v484_v0 = vmul.f32 %v464_v56, %v415_v35  ;;  %127 = vst.msk [vmem:[#allocation2 + $0x30] sm:$0xff] %vm120_vm1, %v115_v7 }
 0x9fc   :  { %v469_v55 = vpop.permute.xlu0 %468 }
 0x9fd   :  { %v471_v57 = vmul.f32 %v469_v55, %v464_v56 }
 0x9ff   :  { %473 = vrot.lane.b32.xlu1 %v471_v57, %s1573_s19  ;;  %v563_v57 = vld [vmem:[#allocation2 + $0x30] sm:$0xff] }
 0xa71   :  { %v474_v58 = vpop.permute.xlu1 %473 }
 0xa72   :  { %v476_v59 = vadd.f32 %v474_v58, %v423_v5  ;;  %v1871_v5 = vld [vmem:[%s2086_s7 + $0x10] sm:$0xff] }
 0xa73   :  { %816 = vmatpush.msra.mxu1 %v1871_v5 }
 0xa74   :  { %1477 = vtanh.f32 %v476_v59 }
 0xa75   :  { %817 = vmatpush.msra.mxu1 %v1878_v42 }
 0xa77   :  { %818 = vmatpush.msra.mxu1 %v1885_v43 }
 0xa7a   :  { %v1478_v60 = vpop.eup %1477 }
 0xa7b   :  { %480 = vrot.lane.b32.xlu2 %v1478_v60, %s1574_s4  ;;  %v799_v60 = vld [vmem:[#allocation2] sm:$0xff] }
 0xad5   :  { %v481_v63 = vpop.permute.xlu2 %480 }
 0xad6   :  { %v483_v2 = vmul.f32 %v481_v63, %v478_v62 }
 0xad8   :  { %v485_v4 = vadd.f32 %v484_v0, %v483_v2 }
 0xada   :  { %487 = vrot.lane.b32.xlu0 %v485_v4, %s1574_s4 }
 0xb4c   :  { %v488_v9 = vpop.permute.xlu0 %487 }
 0xb4d   :  { %1397 = vst.msk [vmem:[%s2089_s10 + $0x20] sm:$0xff] %vm54_vm0, %v488_v9  ;;  %1398 = vmatmul.msk.f32.vlgmr.msra.gmra.mxu2 %vm54_vm0, %v488_v9 }
 0xb4e   :  { %891 = vmatpush.msra.mxu2 %v1866_v41 }
 0xb50   :  { %892 = vmatpush.msra.mxu2 %v1871_v5 }
 0xb52   :  { %893 = vmatpush.msra.mxu2 %v1878_v42 }
 0xb54   :  { %v707_v10 = vld [vmem:[%s2089_s10 + $0x20] sm:$0xff]  ;;  %894 = vmatpush.msra.mxu2 %v1885_v43 }
 0xb55   :  { %1411 = vmatmul.msk.f32.gmra.mxu3 %vm54_vm0, %v707_v10 }
 0xbd0   :  { %v513_v13 = vpop.f32.mrf.mxu2 }
 0xbd1   :  { %v536_v14 = vadd.f32 %v513_v13, %v1708_v12  ;;  %v516_v18 = vadd.f32 %v513_v13, %v493_v17 }
 0xbd3   :  { %538 = vrot.lane.b32.xlu1 %v536_v14, %s1573_s19  ;;  %v1399_v19 = vmul.f32 -1.442695, %v516_v18 }
 0xbd5   :  { %1479 = vpow2.f32 %v1399_v19 }
 0xbd8   :  { %v772_v15 = vpop.f32.mrf.mxu3 }
 0xbd9   :  { %v773_v16 = vadd.f32 %v1753_v54, %v772_v15 }
 0xbdb   :  { %788 = vst.msk [vmem:[#allocation2 + $0x20] sm:$0xff] %vm120_vm1, %v773_v16  ;;  %v1480_v20 = vpop.eup %1479 }
 0xbdc   :  { %v520_v21 = vadd.f32 1.0, %v1480_v20 }
 0xbde   :  { %1481 = vrcp.f32 %v520_v21  ;;  %v532_v27 = vand.u32 2147483648, %v520_v21  ;;  %vm526_vm9 = vweird.f32 %v520_v21  ;;  %v530_v28 = vand.u32 2147483647, %v520_v21 }
 0xbe0   :  { %v533_v30 = vor.u32 1.1754944e-38, %v532_v27  ;;  %vm531_vm11 = vcmp.eq.f32.partialorder %v530_v28, 8.507059e+37 }
 0xbe4   :  { %v1482_v22 = vpop.eup %1481 }
 0xbe5   :  { %v522_v23 = vmul.f32 %v1482_v22, %v520_v21  ;;  %vm527_vm8 = vweird.f32 %v1482_v22 }
 0xbe6   :  { %vm528_vm10 = vmor %vm526_vm9, %vm527_vm8 }
 0xbe7   :  { %v523_v24 = vsub.f32 1.0, %v522_v23 }
 0xbe9   :  { %v524_v25 = vmul.f32 %v1482_v22, %v523_v24 }
 0xbeb   :  { %v525_v26 = vadd.f32 %v1482_v22, %v524_v25 }
 0xbed   :  { %v529_v29 = vsel %vm528_vm10, %v1482_v22, %v525_v26 }
 0xbee   :  { %v534_v32 = vsel %vm531_vm11, %v533_v30, %v529_v29 }
 0xbef   :  { %v548_v38 = vsub.f32 1.0, %v534_v32  ;;  %v554_v40 = vmul.f32 %v534_v32, %v485_v4 }
 0xc45   :  { %v539_v31 = vpop.permute.xlu1 %538 }
 0xc46   :  { %v541_v33 = vmul.f32 %v539_v31, %v534_v32 }
 0xc48   :  { %543 = vrot.lane.b32.xlu2 %v541_v33, %s1573_s19 }
 0xc50   :  { %845 = vrot.lane.b32.xlu2 %v1448_v44, %s1573_s19 }
 0xca2   :  { %v544_v34 = vpop.permute.xlu2 %543 }
 0xca3   :  { %v546_v35 = vadd.f32 %v544_v34, %v493_v17 }
 0xca5   :  { %1483 = vtanh.f32 %v546_v35 }
 0xcaa   :  { %v1923_v51 = vpop.permute.xlu2 %845 }
 0xcab   :  { %v1484_v36 = vpop.eup %1483 }
 0xcac   :  { %550 = vrot.lane.b32.xlu0 %v1484_v36, %s1574_s4 }
 0xd1e   :  { %v551_v39 = vpop.permute.xlu0 %550 }
 0xd1f   :  { %v553_v1 = vmul.f32 %v551_v39, %v548_v38 }
 0xd21   :  { %v1859_v3 = vadd.f32 %v554_v40, %v553_v1 }
 0xd23   :  { %557 = vrot.lane.b32.xlu1 %v1859_v3, %s1574_s4 }
 0xd95   :  { %v558_v46 = vpop.permute.xlu1 %557 }
 0xd96   :  { %1400 = vst.msk [vmem:[%s2089_s10 + $0x28] sm:$0xff] %vm54_vm0, %v558_v46  ;;  %1401 = vmatmul.msk.f32.vlgmr.msrb.gmra.mxu1 %vm54_vm0, %v558_v46 }
 0xd97   :  { %959 = vmatpush.msrb.mxu1 %v1866_v41 }
 0xd99   :  { %960 = vmatpush.msrb.mxu1 %v1871_v5 }
 0xd9b   :  { %961 = vmatpush.msrb.mxu1 %v1878_v42 }
 0xd9d   :  { %v708_v48 = vld [vmem:[%s2089_s10 + $0x28] sm:$0xff]  ;;  %962 = vmatpush.msrb.mxu1 %v1885_v43 }
 0xd9e   :  { %1412 = vmatmul.msk.f32.gmra.mxu3 %vm54_vm0, %v708_v48  ;;  %1416 = vmatmul.msk.f32.vlgmr.msra.gmra.mxu1 %vm54_vm0, %v1907_v47 }
 0xd9f   :  { %1095 = vmatpush.msra.mxu1 %v1866_v41 }
 0xda1   :  { %1096 = vmatpush.msra.mxu1 %v1871_v5 }
 0xda3   :  { %1097 = vmatpush.msra.mxu1 %v1878_v42 }
 0xda5   :  { %1098 = vmatpush.msra.mxu1 %v1885_v43 }
 0xe13   :  { %v583_v49 = vpop.f32.mrf.mxu1 }
 0xe14   :  { %v606_v50 = vadd.f32 %v583_v49, %v1708_v12  ;;  %v586_v58 = vadd.f32 %v583_v49, %v563_v57 }
 0xe16   :  { %608 = vrot.lane.b32.xlu0 %v606_v50, %s1573_s19  ;;  %v1402_v59 = vmul.f32 -1.442695, %v586_v58 }
 0xe18   :  { %1485 = vpow2.f32 %v1402_v59 }
 0xe1b   :  { %v820_v52 = vpop.f32.mrf.mxu1 }
 0xe1c   :  { %v848_v53 = vadd.f32 %v1923_v51, %v820_v52  ;;  %v823_v61 = vadd.f32 %v820_v52, %v799_v60  ;;  %v45_v52 = vld [vmem:[%s2079_s0 + $0x38] sm:$0xff]  ;;  %s1577_s0 = smov 8  }
 0xe1d   :  { %1383 = vmatmul.msk.f32.gmra.mxu0 %vm54_vm0, %v45_v52 }
 0xe1e   :  { %850 = vrot.lane.b32.xlu1 %v848_v53, %s1573_s19  ;;  %v1417_v62 = vmul.f32 -1.442695, %v823_v61  ;;  %v1486_v63 = vpop.eup %1485 }
 0xe1f   :  { %v590_v0 = vadd.f32 1.0, %v1486_v63  ;;  %v876_v63 = vld [vmem:[#allocation2 + $0x8] sm:$0xff] }
 0xe20   :  { %1487 = vpow2.f32 %v1417_v62 }
 0xe21   :  { %v775_v55 = vpop.f32.mrf.mxu3  ;;  %1489 = vrcp.f32 %v590_v0  ;;  %v602_v17 = vand.u32 2147483648, %v590_v0  ;;  %vm596_vm13 = vweird.f32 %v590_v0  ;;  %v600_v18 = vand.u32 2147483647, %v590_v0 }
 0xe22   :  { %v776_v56 = vadd.f32 %v1753_v54, %v775_v55 }
 0xe23   :  { %v603_v21 = vor.u32 1.1754944e-38, %v602_v17  ;;  %vm601_vm15 = vcmp.eq.f32.partialorder %v600_v18, 8.507059e+37 }
 0xe24   :  { %789 = vst.msk [vmem:[#allocation2 + $0x28] sm:$0xff] %vm120_vm1, %v776_v56 }
 0xe26   :  { %v1488_v2 = vpop.eup %1487 }
 0xe27   :  { %v827_v4 = vadd.f32 1.0, %v1488_v2  ;;  %v1490_v6 = vpop.eup %1489 }
 0xe28   :  { %v592_v8 = vmul.f32 %v1490_v6, %v590_v0  ;;  %vm597_vm12 = vweird.f32 %v1490_v6 }
 0xe29   :  { %1491 = vrcp.f32 %v827_v4  ;;  %vm598_vm14 = vmor %vm596_vm13, %vm597_vm12  ;;  %v839_v26 = vand.u32 2147483648, %v827_v4  ;;  %vm833_vm3 = vweird.f32 %v827_v4  ;;  %v837_v27 = vand.u32 2147483647, %v827_v4 }
 0xe2a   :  { %v593_v9 = vsub.f32 1.0, %v592_v8 }
 0xe2b   :  { %v840_v29 = vor.u32 1.1754944e-38, %v839_v26  ;;  %vm838_vm5 = vcmp.eq.f32.partialorder %v837_v27, 8.507059e+37 }
 0xe2c   :  { %v594_v13 = vmul.f32 %v1490_v6, %v593_v9 }
 0xe2e   :  { %v595_v15 = vadd.f32 %v1490_v6, %v594_v13 }
 0xe2f   :  { %v1492_v10 = vpop.eup %1491 }
 0xe30   :  { %v829_v14 = vmul.f32 %v1492_v10, %v827_v4  ;;  %v599_v19 = vsel %vm598_vm14, %v1490_v6, %v595_v15  ;;  %vm834_vm2 = vweird.f32 %v1492_v10 }
 0xe31   :  { %v604_v23 = vsel %vm601_vm15, %v603_v21, %v599_v19  ;;  %vm835_vm4 = vmor %vm833_vm3, %vm834_vm2 }
 0xe32   :  { %v830_v16 = vsub.f32 1.0, %v829_v14  ;;  %v618_v39 = vsub.f32 1.0, %v604_v23  ;;  %v624_v1 = vmul.f32 %v604_v23, %v1859_v3 }
 0xe34   :  { %v831_v20 = vmul.f32 %v1492_v10, %v830_v16 }
 0xe36   :  { %v832_v25 = vadd.f32 %v1492_v10, %v831_v20 }
 0xe38   :  { %v836_v28 = vsel %vm835_vm4, %v1492_v10, %v832_v25 }
 0xe39   :  { %v841_v31 = vsel %vm838_vm5, %v840_v29, %v836_v28 }
 0xe3a   :  { %v860_v46 = vsub.f32 1.0, %v841_v31 }
 0xe88   :  { %v609_v22 = vpop.permute.xlu0 %608 }
 0xe89   :  { %v611_v24 = vmul.f32 %v609_v22, %v604_v23 }
 0xe8b   :  { %613 = vrot.lane.b32.xlu2 %v611_v24, %s1573_s19 }
 0xe90   :  { %v851_v30 = vpop.permute.xlu1 %850 }
 0xe91   :  { %v853_v32 = vmul.f32 %v851_v30, %v841_v31 }
 0xe93   :  { %855 = vrot.lane.b32.xlu0 %v853_v32, %s1573_s19 }
 0xe9a   :  { %v117_v56 = vpop.f32.mrf.mxu0 }
 0xe9b   :  { %866 = vrot.lane.b32.xlu0 %v1907_v47, %s1572_s18 }
 0xee5   :  { %v614_v33 = vpop.permute.xlu2 %613 }
 0xee6   :  { %v616_v34 = vadd.f32 %v614_v33, %v563_v57  ;;  %v118_v57 = vadd.f32 %v1706_v11, %v117_v56 }
 0xee8   :  { %1493 = vtanh.f32 %v616_v34  ;;  %128 = vst.msk [vmem:[#allocation2 + $0x38] sm:$0xff] %vm120_vm1, %v118_v57 }
 0xeee   :  { %v1494_v35 = vpop.eup %1493 }
 0xeef   :  { %620 = vrot.lane.b32.xlu1 %v1494_v35, %s1574_s4 }
 0xf05   :  { %v856_v36 = vpop.permute.xlu0 %855 }
 0xf06   :  { %v858_v37 = vadd.f32 %v856_v36, %v799_v60 }
 0xf08   :  { %1495 = vtanh.f32 %v858_v37 }
 0xf0d   :  { %v867_v7 = vpop.permute.xlu0 %866 }
 0xf0e   :  { %v1496_v38 = vpop.eup %1495  ;;  %v869_v48 = vmul.f32 %v867_v7, %v841_v31  ;;  %v944_v31 = vld [vmem:[#allocation2 + $0x10] sm:$0xff] }
 0xf0f   :  { %862 = vrot.lane.b32.xlu2 %v1496_v38, %s1574_s4 }
 0xf61   :  { %v621_v40 = vpop.permute.xlu1 %620 }
 0xf62   :  { %v623_v44 = vmul.f32 %v621_v40, %v618_v39 }
 0xf64   :  { %v1936_v45 = vadd.f32 %v624_v1, %v623_v44 }
 0xf66   :  { %627 = vrot.lane.b32.xlu1 %v1936_v45, %s1574_s4 }
 0xf69   :  { %v863_v47 = vpop.permute.xlu2 %862 }
 0xf6a   :  { %v865_v49 = vmul.f32 %v863_v47, %v860_v46 }
 0xf6c   :  { %v870_v50 = vadd.f32 %v869_v48, %v865_v49 }
 0xf6e   :  { %872 = vrot.lane.b32.xlu2 %v870_v50, %s1574_s4 }
 0xfc8   :  { %v873_v3 = vpop.permute.xlu2 %872 }
 0xfc9   :  { %875 = vst.msk [vmem:[%s2089_s10] sm:$0xff] %vm54_vm0, %v873_v3 }
 0xfd8   :  { %v628_v53 = vpop.permute.xlu1 %627 }
 0xfd9   :  { %1403 = vst.msk [vmem:[%s2089_s10 + $0x30] sm:$0xff] %vm54_vm0, %v628_v53  ;;  %1404 = vmatmul.msk.f32.vlgmr.msrb.gmra.mxu2 %vm54_vm0, %v628_v53 }
 0xfda   :  { %1027 = vmatpush.msrb.mxu2 %v1866_v41 }
 0xfdc   :  { %1028 = vmatpush.msrb.mxu2 %v1871_v5 }
 0xfde   :  { %1029 = vmatpush.msrb.mxu2 %v1878_v42 }
 0xfe0   :  { %v709_v55 = vld [vmem:[%s2089_s10 + $0x30] sm:$0xff]  ;;  %1030 = vmatpush.msrb.mxu2 %v1885_v43 }
 0xfe1   :  { %1413 = vmatmul.msk.f32.gmra.mxu3 %vm54_vm0, %v709_v55  ;;  %1418 = vmatmul.msk.f32.vlgmr.msra.gmra.mxu2 %vm54_vm0, %v873_v3 }
 0xfe2   :  { %1163 = vmatpush.msra.mxu2 %v1866_v41 }
 0xfe4   :  { %1164 = vmatpush.msra.mxu2 %v1871_v5 }
 0xfe6   :  { %1165 = vmatpush.msra.mxu2 %v1878_v42 }
 0xfe8   :  { %1166 = vmatpush.msra.mxu2 %v1885_v43 }
0x105c   :  { %v1969_v58 = vpop.f32.mrf.mxu2 }
0x1064   :  { %v778_v59 = vpop.f32.mrf.mxu3  ;;  %v896_v60 = vpop.f32.mrf.mxu2 }
0x1065   :  { %v779_v61 = vadd.f32 %v1753_v54, %v778_v59  ;;  %v919_v62 = vadd.f32 %v896_v60, %v1923_v51  ;;  %v899_v0 = vadd.f32 %v896_v60, %v876_v63 }
0x1067   :  { %790 = vst.msk [vmem:[#allocation2 + $0x30] sm:$0xff] %vm120_vm1, %v779_v61  ;;  %921 = vrot.lane.b32.xlu0 %v919_v62, %s1573_s19  ;;  %v1419_v2 = vmul.f32 -1.442695, %v899_v0 }
0x1069   :  { %1497 = vpow2.f32 %v1419_v2 }
0x106f   :  { %v1498_v4 = vpop.eup %1497 }
0x1070   :  { %v903_v11 = vadd.f32 1.0, %v1498_v4 }
0x1072   :  { %1499 = vrcp.f32 %v903_v11  ;;  %v915_v54 = vand.u32 2147483648, %v903_v11  ;;  %vm909_vm7 = vweird.f32 %v903_v11  ;;  %v913_v14 = vand.u32 2147483647, %v903_v11 }
0x1074   :  { %v916_v16 = vor.u32 1.1754944e-38, %v915_v54  ;;  %vm914_vm9 = vcmp.eq.f32.partialorder %v913_v14, 8.507059e+37 }
0x1078   :  { %v1500_v6 = vpop.eup %1499 }
0x1079   :  { %v905_v8 = vmul.f32 %v1500_v6, %v903_v11  ;;  %vm910_vm6 = vweird.f32 %v1500_v6 }
0x107a   :  { %vm911_vm8 = vmor %vm909_vm7, %vm910_vm6 }
0x107b   :  { %v906_v9 = vsub.f32 1.0, %v905_v8 }
0x107d   :  { %v907_v10 = vmul.f32 %v1500_v6, %v906_v9 }
0x107f   :  { %v908_v13 = vadd.f32 %v1500_v6, %v907_v10 }
0x1081   :  { %v912_v15 = vsel %vm911_vm8, %v1500_v6, %v908_v13 }
0x1082   :  { %v917_v18 = vsel %vm914_vm9, %v916_v16, %v912_v15 }
0x1083   :  { %v931_v23 = vsub.f32 1.0, %v917_v18  ;;  %v937_v25 = vmul.f32 %v917_v18, %v870_v50 }
0x10d9   :  { %v922_v17 = vpop.permute.xlu0 %921 }
0x10da   :  { %v924_v19 = vmul.f32 %v922_v17, %v917_v18 }
0x10dc   :  { %926 = vrot.lane.b32.xlu1 %v924_v19, %s1573_s19 }
0x114e   :  { %v927_v20 = vpop.permute.xlu1 %926 }
0x114f   :  { %v929_v21 = vadd.f32 %v927_v20, %v876_v63  ;;  %v1012_v63 = vld [vmem:[#allocation2 + $0x18] sm:$0xff] }
0x1151   :  { %1501 = vtanh.f32 %v929_v21 }
0x1157   :  { %v1502_v22 = vpop.eup %1501 }
0x1158   :  { %933 = vrot.lane.b32.xlu2 %v1502_v22, %s1574_s4 }
0x11b2   :  { %v934_v24 = vpop.permute.xlu2 %933 }
0x11b3   :  { %v936_v26 = vmul.f32 %v934_v24, %v931_v23 }
0x11b5   :  { %v938_v27 = vadd.f32 %v937_v25, %v936_v26 }
0x11b7   :  { %940 = vrot.lane.b32.xlu0 %v938_v27, %s1574_s4 }
0x1229   :  { %v941_v28 = vpop.permute.xlu0 %940 }
0x122a   :  { %1420 = vst.msk [vmem:[%s2089_s10 + $0x8] sm:$0xff] %vm54_vm0, %v941_v28  ;;  %1421 = vmatmul.msk.f32.vlgmr.msrb.gmra.mxu1 %vm54_vm0, %v941_v28 }
0x122b   :  { %1231 = vmatpush.msrb.mxu1 %v1866_v41 }
0x122d   :  { %1232 = vmatpush.msrb.mxu1 %v1871_v5 }
0x122f   :  { %1233 = vmatpush.msrb.mxu1 %v1878_v42 }
0x1231   :  { %1234 = vmatpush.msrb.mxu1 %v1885_v43 }
0x12a7   :  { %v964_v29 = vpop.f32.mrf.mxu1 }
0x12a8   :  { %v987_v30 = vadd.f32 %v964_v29, %v1923_v51  ;;  %v967_v32 = vadd.f32 %v964_v29, %v944_v31 }
0x12aa   :  { %989 = vrot.lane.b32.xlu1 %v987_v30, %s1573_s19  ;;  %v1422_v33 = vmul.f32 -1.442695, %v967_v32 }
0x12ac   :  { %1503 = vpow2.f32 %v1422_v33 }
0x12b2   :  { %v1504_v34 = vpop.eup %1503 }
0x12b3   :  { %v971_v35 = vadd.f32 1.0, %v1504_v34 }
0x12b5   :  { %1505 = vrcp.f32 %v971_v35  ;;  %v983_v1 = vand.u32 2147483648, %v971_v35  ;;  %vm977_vm11 = vweird.f32 %v971_v35  ;;  %v981_v44 = vand.u32 2147483647, %v971_v35 }
0x12b7   :  { %v984_v46 = vor.u32 1.1754944e-38, %v983_v1  ;;  %vm982_vm13 = vcmp.eq.f32.partialorder %v981_v44, 8.507059e+37 }
0x12bb   :  { %v1506_v36 = vpop.eup %1505 }
0x12bc   :  { %v973_v37 = vmul.f32 %v1506_v36, %v971_v35  ;;  %vm978_vm10 = vweird.f32 %v1506_v36 }
0x12bd   :  { %vm979_vm12 = vmor %vm977_vm11, %vm978_vm10 }
0x12be   :  { %v974_v38 = vsub.f32 1.0, %v973_v37 }
0x12c0   :  { %v975_v39 = vmul.f32 %v1506_v36, %v974_v38 }
0x12c2   :  { %v976_v40 = vadd.f32 %v1506_v36, %v975_v39 }
0x12c4   :  { %v980_v7 = vsel %vm979_vm12, %v1506_v36, %v976_v40 }
0x12c5   :  { %v985_v48 = vsel %vm982_vm13, %v984_v46, %v980_v7 }
0x12c6   :  { %v999_v53 = vsub.f32 1.0, %v985_v48  ;;  %v1005_v56 = vmul.f32 %v985_v48, %v938_v27  ;;  %v1080_v27 = vld [vmem:[#allocation2 + $0x20] sm:$0xff] }
0x131c   :  { %v990_v47 = vpop.permute.xlu1 %989 }
0x131d   :  { %v992_v49 = vmul.f32 %v990_v47, %v985_v48 }
0x131f   :  { %994 = vrot.lane.b32.xlu2 %v992_v49, %s1573_s19 }
0x1379   :  { %v995_v50 = vpop.permute.xlu2 %994 }
0x137a   :  { %v997_v52 = vadd.f32 %v995_v50, %v944_v31 }
0x137c   :  { %1507 = vtanh.f32 %v997_v52 }
0x1382   :  { %v1508_v3 = vpop.eup %1507 }
0x1383   :  { %1001 = vrot.lane.b32.xlu0 %v1508_v3, %s1574_s4 }
0x13f5   :  { %v1002_v55 = vpop.permute.xlu0 %1001 }
0x13f6   :  { %v1004_v57 = vmul.f32 %v1002_v55, %v999_v53 }
0x13f8   :  { %v1006_v59 = vadd.f32 %v1005_v56, %v1004_v57 }
0x13fa   :  { %1008 = vrot.lane.b32.xlu1 %v1006_v59, %s1574_s4 }
0x146c   :  { %v1009_v60 = vpop.permute.xlu1 %1008 }
0x146d   :  { %1423 = vst.msk [vmem:[%s2089_s10 + $0x10] sm:$0xff] %vm54_vm0, %v1009_v60  ;;  %1424 = vmatmul.msk.f32.vlgmr.msrb.gmra.mxu2 %vm54_vm0, %v1009_v60 }
0x146e   :  { %1299 = vmatpush.msrb.mxu2 %v1866_v41 }
0x1470   :  { %1300 = vmatpush.msrb.mxu2 %v1871_v5 }
0x1472   :  { %1301 = vmatpush.msrb.mxu2 %v1878_v42 }
0x1474   :  { %1302 = vmatpush.msrb.mxu2 %v1885_v43 }
0x14f0   :  { %v1032_v61 = vpop.f32.mrf.mxu2 }
0x14f1   :  { %v1055_v62 = vadd.f32 %v1032_v61, %v1923_v51  ;;  %v1035_v0 = vadd.f32 %v1032_v61, %v1012_v63 }
0x14f3   :  { %1057 = vrot.lane.b32.xlu2 %v1055_v62, %s1573_s19  ;;  %v1425_v2 = vmul.f32 -1.442695, %v1035_v0 }
0x14f5   :  { %1509 = vpow2.f32 %v1425_v2 }
0x14fb   :  { %v1510_v4 = vpop.eup %1509 }
0x14fc   :  { %v1039_v11 = vadd.f32 1.0, %v1510_v4 }
0x14fe   :  { %1511 = vrcp.f32 %v1039_v11  ;;  %v1051_v42 = vand.u32 2147483648, %v1039_v11  ;;  %vm1045_vm15 = vweird.f32 %v1039_v11  ;;  %v1049_v43 = vand.u32 2147483647, %v1039_v11 }
0x1500   :  { %v1052_v13 = vor.u32 1.1754944e-38, %v1051_v42  ;;  %vm1050_vm3 = vcmp.eq.f32.partialorder %v1049_v43, 8.507059e+37 }
0x1504   :  { %v1512_v6 = vpop.eup %1511 }
0x1505   :  { %v1041_v41 = vmul.f32 %v1512_v6, %v1039_v11  ;;  %vm1046_vm14 = vweird.f32 %v1512_v6 }
0x1506   :  { %vm1047_vm2 = vmor %vm1045_vm15, %vm1046_vm14 }
0x1507   :  { %v1042_v8 = vsub.f32 1.0, %v1041_v41 }
0x1509   :  { %v1043_v5 = vmul.f32 %v1512_v6, %v1042_v8 }
0x150b   :  { %v1044_v9 = vadd.f32 %v1512_v6, %v1043_v5 }
0x150d   :  { %v1048_v10 = vsel %vm1047_vm2, %v1512_v6, %v1044_v9 }
0x150e   :  { %v1053_v14 = vsel %vm1050_vm3, %v1052_v13, %v1048_v10  ;;  %v676_v13 = vadd.f32 %v1969_v58, %v1708_v12 }
0x150f   :  { %v1067_v19 = vsub.f32 1.0, %v1053_v14  ;;  %v1073_v21 = vmul.f32 %v1053_v14, %v1006_v59  ;;  %v1148_v59 = vld [vmem:[#allocation2 + $0x28] sm:$0xff] }
0x154d   :  { %v1058_v54 = vpop.permute.xlu2 %1057 }
0x154e   :  { %v1060_v15 = vmul.f32 %v1058_v54, %v1053_v14 }
0x1550   :  { %1062 = vrot.lane.b32.xlu0 %v1060_v15, %s1573_s19 }
0x15c2   :  { %v1063_v16 = vpop.permute.xlu0 %1062 }
0x15c3   :  { %v1065_v17 = vadd.f32 %v1063_v16, %v1012_v63  ;;  %v633_v16 = vld [vmem:[#allocation2 + $0x38] sm:$0xff] }
0x15c5   :  { %1513 = vtanh.f32 %v1065_v17  ;;  %v656_v17 = vadd.f32 %v1969_v58, %v633_v16 }
0x15cb   :  { %v1514_v18 = vpop.eup %1513 }
0x15cc   :  { %1069 = vrot.lane.b32.xlu1 %v1514_v18, %s1574_s4  ;;  %v1405_v18 = vmul.f32 -1.442695, %v656_v17 }
0x163e   :  { %v1070_v20 = vpop.permute.xlu1 %1069 }
0x163f   :  { %v1072_v22 = vmul.f32 %v1070_v20, %v1067_v19 }
0x1641   :  { %v1074_v23 = vadd.f32 %v1073_v21, %v1072_v22 }
0x1643   :  { %1076 = vrot.lane.b32.xlu2 %v1074_v23, %s1574_s4 }
0x169d   :  { %v1077_v24 = vpop.permute.xlu2 %1076 }
0x169e   :  { %1426 = vst.msk [vmem:[%s2089_s10 + $0x18] sm:$0xff] %vm54_vm0, %v1077_v24  ;;  %1427 = vmatmul.msk.f32.vlgmr.msra.gmra.mxu1 %vm54_vm0, %v1077_v24 }
0x171b   :  { %v1100_v25 = vpop.f32.mrf.mxu1 }
0x171c   :  { %v1123_v26 = vadd.f32 %v1100_v25, %v1923_v51  ;;  %v1103_v28 = vadd.f32 %v1100_v25, %v1080_v27 }
0x171e   :  { %1125 = vrot.lane.b32.xlu0 %v1123_v26, %s1573_s19  ;;  %v1428_v29 = vmul.f32 -1.442695, %v1103_v28 }
0x1720   :  { %1515 = vpow2.f32 %v1428_v29 }
0x1726   :  { %v1516_v30 = vpop.eup %1515 }
0x1727   :  { %v1107_v31 = vadd.f32 1.0, %v1516_v30 }
0x1729   :  { %1517 = vrcp.f32 %v1107_v31  ;;  %v1119_v37 = vand.u32 2147483648, %v1107_v31  ;;  %vm1113_vm5 = vweird.f32 %v1107_v31  ;;  %v1117_v38 = vand.u32 2147483647, %v1107_v31 }
0x172b   :  { %v1120_v40 = vor.u32 1.1754944e-38, %v1119_v37  ;;  %vm1118_vm7 = vcmp.eq.f32.partialorder %v1117_v38, 8.507059e+37 }
0x172f   :  { %v1518_v32 = vpop.eup %1517 }
0x1730   :  { %v1109_v33 = vmul.f32 %v1518_v32, %v1107_v31  ;;  %vm1114_vm4 = vweird.f32 %v1518_v32 }
0x1731   :  { %vm1115_vm6 = vmor %vm1113_vm5, %vm1114_vm4 }
0x1732   :  { %v1110_v34 = vsub.f32 1.0, %v1109_v33 }
0x1734   :  { %v1111_v35 = vmul.f32 %v1518_v32, %v1110_v34 }
0x1736   :  { %v1112_v36 = vadd.f32 %v1518_v32, %v1111_v35 }
0x1738   :  { %v1116_v39 = vsel %vm1115_vm6, %v1518_v32, %v1112_v36 }
0x1739   :  { %v1121_v44 = vsel %vm1118_vm7, %v1120_v40, %v1116_v39 }
0x173a   :  { %v1135_v49 = vsub.f32 1.0, %v1121_v44  ;;  %v1141_v52 = vmul.f32 %v1121_v44, %v1074_v23 }
0x1790   :  { %v1126_v1 = vpop.permute.xlu0 %1125 }
0x1791   :  { %v1128_v7 = vmul.f32 %v1126_v1, %v1121_v44  ;;  %v1216_v44 = vld [vmem:[#allocation2 + $0x30] sm:$0xff] }
0x1793   :  { %1130 = vrot.lane.b32.xlu1 %v1128_v7, %s1573_s19 }
0x1805   :  { %v1131_v46 = vpop.permute.xlu1 %1130 }
0x1806   :  { %v1133_v47 = vadd.f32 %v1131_v46, %v1080_v27 }
0x1808   :  { %1519 = vtanh.f32 %v1133_v47 }
0x180e   :  { %v1520_v48 = vpop.eup %1519 }
0x180f   :  { %1137 = vrot.lane.b32.xlu2 %v1520_v48, %s1574_s4 }
0x1869   :  { %v1138_v50 = vpop.permute.xlu2 %1137 }
0x186a   :  { %v1140_v3 = vmul.f32 %v1138_v50, %v1135_v49 }
0x186c   :  { %v1142_v53 = vadd.f32 %v1141_v52, %v1140_v3 }
0x186e   :  { %1144 = vrot.lane.b32.xlu0 %v1142_v53, %s1574_s4 }
0x18e0   :  { %v1145_v55 = vpop.permute.xlu0 %1144 }
0x18e1   :  { %1429 = vst.msk [vmem:[%s2089_s10 + $0x20] sm:$0xff] %vm54_vm0, %v1145_v55  ;;  %1430 = vmatmul.msk.f32.vlgmr.msra.gmra.mxu2 %vm54_vm0, %v1145_v55 }
0x1964   :  { %v1168_v56 = vpop.f32.mrf.mxu2 }
0x1965   :  { %v1191_v57 = vadd.f32 %v1168_v56, %v1923_v51  ;;  %v1171_v60 = vadd.f32 %v1168_v56, %v1148_v59 }
0x1967   :  { %1193 = vrot.lane.b32.xlu1 %v1191_v57, %s1573_s19  ;;  %v1431_v61 = vmul.f32 -1.442695, %v1171_v60 }
0x1969   :  { %1521 = vpow2.f32 %v1431_v61 }
0x196f   :  { %v1522_v62 = vpop.eup %1521 }
0x1970   :  { %v1175_v63 = vadd.f32 1.0, %v1522_v62 }
0x1972   :  { %1523 = vrcp.f32 %v1175_v63  ;;  %v1187_v41 = vand.u32 2147483648, %v1175_v63  ;;  %vm1181_vm9 = vweird.f32 %v1175_v63  ;;  %v1185_v8 = vand.u32 2147483647, %v1175_v63 }
0x1974   :  { %v1188_v9 = vor.u32 1.1754944e-38, %v1187_v41  ;;  %vm1186_vm11 = vcmp.eq.f32.partialorder %v1185_v8, 8.507059e+37 }
0x1978   :  { %v1524_v0 = vpop.eup %1523 }
0x1979   :  { %v1177_v2 = vmul.f32 %v1524_v0, %v1175_v63  ;;  %vm1182_vm8 = vweird.f32 %v1524_v0 }
0x197a   :  { %vm1183_vm10 = vmor %vm1181_vm9, %vm1182_vm8 }
0x197b   :  { %v1178_v4 = vsub.f32 1.0, %v1177_v2 }
0x197d   :  { %v1179_v11 = vmul.f32 %v1524_v0, %v1178_v4 }
0x197f   :  { %v1180_v6 = vadd.f32 %v1524_v0, %v1179_v11 }
0x1981   :  { %v1184_v5 = vsel %vm1183_vm10, %v1524_v0, %v1180_v6 }
0x1982   :  { %v1189_v43 = vsel %vm1186_vm11, %v1188_v9, %v1184_v5 }
0x1983   :  { %v1203_v24 = vsub.f32 1.0, %v1189_v43  ;;  %v1209_v26 = vmul.f32 %v1189_v43, %v1142_v53 }
0x19d9   :  { %v1194_v42 = vpop.permute.xlu1 %1193 }
0x19da   :  { %v1196_v10 = vmul.f32 %v1194_v42, %v1189_v43 }
0x19dc   :  { %1198 = vrot.lane.b32.xlu2 %v1196_v10, %s1573_s19 }
0x19e4   :  { %678 = vrot.lane.b32.xlu2 %v676_v13, %s1573_s19 }
0x1a36   :  { %v1199_v54 = vpop.permute.xlu2 %1198 }
0x1a37   :  { %v1201_v14 = vadd.f32 %v1199_v54, %v1148_v59 }
0x1a39   :  { %1525 = vtanh.f32 %v1201_v14  ;;  %v1545_v14 = vld [vmem:[%s2087_s8] ss:$0 sm:$0xff]  ;;  %s1575_s8 = smov [#allocation3]  }
0x1a3a   :  { %1527 = vpow2.f32 %v1405_v18  ;;  %s1360_s1 = sshll.u32 %s1575_s8, 4  ;;  %s1361_s1 = int_to_ptr.vmem [resolvable:$true] %s1360_s1 }
0x1a3e   :  { %v679_v33 = vpop.permute.xlu2 %678 }
0x1a3f   :  { %v1526_v15 = vpop.eup %1525 }
0x1a40   :  { %1205 = vrot.lane.b32.xlu0 %v1526_v15, %s1574_s4  ;;  %v1528_v19 = vpop.eup %1527 }
0x1a41   :  { %v660_v20 = vadd.f32 1.0, %v1528_v19 }
0x1a43   :  { %1529 = vrcp.f32 %v660_v20  ;;  %v672_v30 = vand.u32 2147483648, %v660_v20  ;;  %vm666_vm13 = vweird.f32 %v660_v20  ;;  %v670_v58 = vand.u32 2147483647, %v660_v20 }
0x1a45   :  { %v673_v32 = vor.u32 1.1754944e-38, %v672_v30  ;;  %vm671_vm15 = vcmp.eq.f32.partialorder %v670_v58, 8.507059e+37 }
0x1a49   :  { %v1530_v21 = vpop.eup %1529 }
0x1a4a   :  { %v662_v22 = vmul.f32 %v1530_v21, %v660_v20  ;;  %vm667_vm12 = vweird.f32 %v1530_v21 }
0x1a4b   :  { %vm668_vm14 = vmor %vm666_vm13, %vm667_vm12 }
0x1a4c   :  { %v663_v23 = vsub.f32 1.0, %v662_v22 }
0x1a4e   :  { %v664_v12 = vmul.f32 %v1530_v21, %v663_v23 }
0x1a50   :  { %v665_v28 = vadd.f32 %v1530_v21, %v664_v12 }
0x1a52   :  { %v669_v31 = vsel %vm668_vm14, %v1530_v21, %v665_v28 }
0x1a53   :  { %v674_v34 = vsel %vm671_vm15, %v673_v32, %v669_v31 }
0x1a54   :  { %v681_v35 = vmul.f32 %v679_v33, %v674_v34  ;;  %v688_v63 = vsub.f32 1.0, %v674_v34  ;;  %v694_v2 = vmul.f32 %v674_v34, %v1936_v45 }
0x1ab2   :  { %v1206_v25 = vpop.permute.xlu0 %1205 }
0x1ab3   :  { %v1208_v27 = vmul.f32 %v1206_v25, %v1203_v24 }
0x1ab5   :  { %v2029_v29 = vadd.f32 %v1209_v26, %v1208_v27 }
0x1ab7   :  { %1212 = vrot.lane.b32.xlu1 %v2029_v29, %s1574_s4 }
0x1abf   :  { %683 = vrot.lane.b32.xlu1 %v681_v35, %s1573_s19 }
0x1b29   :  { %v1213_v36 = vpop.permute.xlu1 %1212 }
0x1b2a   :  { %1432 = vst.msk [vmem:[%s2089_s10 + $0x28] sm:$0xff] %vm54_vm0, %v1213_v36  ;;  %1433 = vmatmul.msk.f32.vlgmr.msrb.gmra.mxu1 %vm54_vm0, %v1213_v36 }
0x1b31   :  { %v684_v37 = vpop.permute.xlu1 %683 }
0x1b32   :  { %v686_v38 = vadd.f32 %v684_v37, %v633_v16 }
0x1b34   :  { %1531 = vtanh.f32 %v686_v38 }
0x1b3a   :  { %v1532_v1 = vpop.eup %1531 }
0x1ba7   :  { %v1236_v39 = vpop.f32.mrf.mxu1 }
0x1ba8   :  { %v1259_v40 = vadd.f32 %v1236_v39, %v1923_v51  ;;  %v1239_v7 = vadd.f32 %v1236_v39, %v1216_v44 }
0x1baa   :  { %1261 = vrot.lane.b32.xlu0 %v1259_v40, %s1573_s19  ;;  %v1434_v46 = vmul.f32 -1.442695, %v1239_v7 }
0x1bac   :  { %1533 = vpow2.f32 %v1434_v46 }
0x1bb2   :  { %690 = vrot.lane.b32.xlu0 %v1532_v1, %s1574_s4  ;;  %v1534_v47 = vpop.eup %1533 }
0x1bb3   :  { %v1243_v48 = vadd.f32 1.0, %v1534_v47 }
0x1bb5   :  { %1535 = vrcp.f32 %v1243_v48  ;;  %v1255_v55 = vand.u32 2147483648, %v1243_v48  ;;  %vm1249_vm3 = vweird.f32 %v1243_v48  ;;  %v1253_v56 = vand.u32 2147483647, %v1243_v48 }
0x1bb7   :  { %v1256_v59 = vor.u32 1.1754944e-38, %v1255_v55  ;;  %vm1254_vm5 = vcmp.eq.f32.partialorder %v1253_v56, 8.507059e+37 }
0x1bbb   :  { %v1536_v49 = vpop.eup %1535 }
0x1bbc   :  { %v1245_v50 = vmul.f32 %v1536_v49, %v1243_v48  ;;  %vm1250_vm2 = vweird.f32 %v1536_v49 }
0x1bbd   :  { %vm1251_vm4 = vmor %vm1249_vm3, %vm1250_vm2 }
0x1bbe   :  { %v1246_v52 = vsub.f32 1.0, %v1245_v50 }
0x1bc0   :  { %v1247_v3 = vmul.f32 %v1536_v49, %v1246_v52 }
0x1bc2   :  { %v1248_v53 = vadd.f32 %v1536_v49, %v1247_v3 }
0x1bc4   :  { %v1252_v57 = vsel %vm1251_vm4, %v1536_v49, %v1248_v53 }
0x1bc5   :  { %v1257_v61 = vsel %vm1254_vm5, %v1256_v59, %v1252_v57 }
0x1bc6   :  { %v1271_v9 = vsub.f32 1.0, %v1257_v61  ;;  %v1277_v43 = vmul.f32 %v1257_v61, %v2029_v29 }
0x1c1c   :  { %v1262_v60 = vpop.permute.xlu0 %1261 }
0x1c1d   :  { %v1264_v62 = vmul.f32 %v1262_v60, %v1257_v61 }
0x1c1f   :  { %1266 = vrot.lane.b32.xlu2 %v1264_v62, %s1573_s19 }
0x1c24   :  { %v691_v0 = vpop.permute.xlu0 %690 }
0x1c25   :  { %v693_v4 = vmul.f32 %v691_v0, %v688_v63 }
0x1c27   :  { %v695_v11 = vadd.f32 %v694_v2, %v693_v4 }
0x1c29   :  { %697 = vrot.lane.b32.xlu2 %v695_v11, %s1574_s4 }
0x1c79   :  { %v1267_v6 = vpop.permute.xlu2 %1266 }
0x1c7a   :  { %v1269_v41 = vadd.f32 %v1267_v6, %v1216_v44 }
0x1c7c   :  { %1537 = vtanh.f32 %v1269_v41 }
0x1c82   :  { %v1538_v8 = vpop.eup %1537 }
0x1c83   :  { %1273 = vrot.lane.b32.xlu1 %v1538_v8, %s1574_s4  ;;  %v698_v5 = vpop.permute.xlu2 %697 }
0x1c84   :  { %1406 = vst.msk [vmem:[%s2089_s10 + $0x38] sm:$0xff] %vm54_vm0, %v698_v5 }
0x1c85   :  { %702 = vst.msk [vmem:[#allocation3] sm:$0xff] %vm54_vm0, %v698_v5 }
0x1c8b   :  { %v710_v45 = vld [vmem:[%s2089_s10 + $0x38] sm:$0xff] }
0x1c8c   :  { %1414 = vmatmul.msk.f32.gmra.mxu3 %vm54_vm0, %v710_v45 }
0x1cf5   :  { %v1274_v42 = vpop.permute.xlu1 %1273 }
0x1cf6   :  { %v1276_v10 = vmul.f32 %v1274_v42, %v1271_v9 }
0x1cf8   :  { %v1278_v13 = vadd.f32 %v1277_v43, %v1276_v10 }
0x1cfa   :  { %1280 = vrot.lane.b32.xlu0 %v1278_v13, %s1574_s4 }
0x1d0f   :  { %v781_v54 = vpop.f32.mrf.mxu3 }
0x1d10   :  { %v782_v15 = vadd.f32 %v1545_v14, %v781_v54 }
0x1d12   :  { %791 = vst.msk [vmem:[#allocation2 + $0x38] sm:$0xff] %vm120_vm1, %v782_v15 }
0x1d19   :  { %v1284_v19 = vld [vmem:[#allocation2 + $0x38] sm:$0xff] }
0x1d6c   :  { %v1281_v16 = vpop.permute.xlu0 %1280 }
0x1d6d   :  { %1435 = vst.msk [vmem:[%s2089_s10 + $0x30] sm:$0xff] %vm54_vm0, %v1281_v16  ;;  %1436 = vmatmul.msk.f32.vlgmr.msrb.gmra.mxu2 %vm54_vm0, %v1281_v16 }
0x1df0   :  { %v1304_v17 = vpop.f32.mrf.mxu2 }
0x1df1   :  { %v1327_v18 = vadd.f32 %v1304_v17, %v1923_v51  ;;  %v1307_v20 = vadd.f32 %v1304_v17, %v1284_v19 }
0x1df3   :  { %1329 = vrot.lane.b32.xlu1 %v1327_v18, %s1573_s19  ;;  %v1437_v21 = vmul.f32 -1.442695, %v1307_v20 }
0x1df5   :  { %1539 = vpow2.f32 %v1437_v21 }
0x1dfb   :  { %v1540_v22 = vpop.eup %1539 }
0x1dfc   :  { %v1311_v23 = vadd.f32 1.0, %v1540_v22 }
0x1dfe   :  { %1541 = vrcp.f32 %v1311_v23  ;;  %v1323_v28 = vand.u32 2147483648, %v1311_v23  ;;  %vm1317_vm6 = vweird.f32 %v1311_v23  ;;  %v1321_v29 = vand.u32 2147483647, %v1311_v23 }
0x1e00   :  { %v1324_v30 = vor.u32 1.1754944e-38, %v1323_v28  ;;  %vm1322_vm8 = vcmp.eq.f32.partialorder %v1321_v29, 8.507059e+37 }
0x1e04   :  { %v1542_v12 = vpop.eup %1541 }
0x1e05   :  { %v1313_v24 = vmul.f32 %v1542_v12, %v1311_v23  ;;  %vm1318_vm1 = vweird.f32 %v1542_v12 }
0x1e06   :  { %vm1319_vm7 = vmor %vm1317_vm6, %vm1318_vm1 }
0x1e07   :  { %v1314_v25 = vsub.f32 1.0, %v1313_v24 }
0x1e09   :  { %v1315_v26 = vmul.f32 %v1542_v12, %v1314_v25 }
0x1e0b   :  { %v1316_v27 = vadd.f32 %v1542_v12, %v1315_v26 }
0x1e0d   :  { %v1320_v51 = vsel %vm1319_vm7, %v1542_v12, %v1316_v27 }
0x1e0e   :  { %v1325_v31 = vsel %vm1322_vm8, %v1324_v30, %v1320_v51 }
0x1e0f   :  { %v1339_v36 = vsub.f32 1.0, %v1325_v31  ;;  %v1345_v38 = vmul.f32 %v1325_v31, %v1278_v13 }
0x1e65   :  { %v1330_v58 = vpop.permute.xlu1 %1329 }
0x1e66   :  { %v1332_v32 = vmul.f32 %v1330_v58, %v1325_v31 }
0x1e68   :  { %1334 = vrot.lane.b32.xlu2 %v1332_v32, %s1573_s19 }
0x1ec2   :  { %v1335_v33 = vpop.permute.xlu2 %1334 }
0x1ec3   :  { %v1337_v34 = vadd.f32 %v1335_v33, %v1284_v19 }
0x1ec5   :  { %1543 = vtanh.f32 %v1337_v34 }
0x1ecb   :  { %v1544_v35 = vpop.eup %1543 }
0x1ecc   :  { %1341 = vrot.lane.b32.xlu0 %v1544_v35, %s1574_s4 }
0x1f3e   :  { %v1342_v37 = vpop.permute.xlu0 %1341 }
0x1f3f   :  { %v1344_v39 = vmul.f32 %v1342_v37, %v1339_v36 }
0x1f41   :  { %v1346_v40 = vadd.f32 %v1345_v38, %v1344_v39 }
0x1f43   :  { %1348 = vrot.lane.b32.xlu1 %v1346_v40, %s1574_s4 }
0x1fb5   :  { %v1349_v1 = vpop.permute.xlu1 %1348 }
0x1fb6   :  { %1438 = vst.msk [vmem:[%s2089_s10 + $0x38] sm:$0xff] %vm54_vm0, %v1349_v1 }
0x1fb7   :  { %1353 = vst.msk [vmem:[#allocation3 + $0x8] sm:$0xff] %vm54_vm0, %v1349_v1 }
0x1fb8   :  { %1368 = dma.vmem_to_hbm [thread:$0]  %s1361_s1, 256, %s1363_s16, [#allocation4], %s1576_s2, %s1576_s2, %s1577_s0  }
0x1fb9   :  { %1570 = dma.done.wait [#allocation4], 256  }
0x1fba   :  { %1571 = vsyncadd [#allocation4], 4294967040 }
0x1fbb   :  { %1375 = vsyncpa [#allocation4], 1 }

</bundles_post_ra>
